<compile_context>
chip_gen: v6e
topology: v6e:2x2x1
jax: 0.10.0
libtpu: 0.0.40
codegen_flags: <defaults>
</compile_context>

<pallas_src>
import jax
import jax.numpy as jnp
from jax import lax
from jax.experimental import pallas as pl
from jax.experimental.pallas import tpu as pltpu

EPS = 1e-5
LEAKY_SLOPE = 0.1


def _round_up(x, m):
    return (x + m - 1) // m * m


def class_block_forward(x, gamma1, beta1, w1_t, gamma2, beta2, w2_t,
                        *, tile_b=256, matmul_dtype=jnp.bfloat16,
                        vmem_budget_bytes=40 * 2**20):
    """ClassBlock forward. Linear weights are passed pre-transposed:
    w1_t: (input_dim, num_bottleneck), w2_t: (num_bottleneck, class_num)."""
    B, d_in = x.shape
    d_bot = w1_t.shape[1]
    c = w2_t.shape[1]
    f32 = jnp.float32

    # ---- lane-pad feature dims to multiples of 128 ----
    d_in_p = _round_up(d_in, 128)
    d_bot_p = _round_up(d_bot, 128)
    c_p = _round_up(c, 128)

    mm_bytes = jnp.dtype(matmul_dtype).itemsize
    x_bytes = jnp.dtype(x.dtype).itemsize
    out_bytes = jnp.dtype(x.dtype).itemsize

    # ---- explicit VMEM budget (double-buffered tiles) -> pick batch tile size ----
    def vmem_bytes(tb):
        a = 2 * tb * d_in_p * x_bytes              # x tiles
        a += 2 * tb * d_bot_p * mm_bytes           # h output tiles
        a += 2 * d_in_p * d_bot_p * mm_bytes       # W1^T (counted x2, conservative)
        a += 4 * d_in_p * 4 + 4 * d_bot_p * 4      # BN scratch + stats output
        b = 2 * tb * d_bot_p * mm_bytes            # classifier: h tiles
        b += 2 * d_bot_p * c_p * mm_bytes          # folded W2
        b += 2 * tb * c_p * out_bytes              # output tiles
        return max(a, b)

    tb = min(tile_b, _round_up(B, 8))
    tb = max(8, tb - tb % 8)
    while tb > 8 and vmem_bytes(tb) > vmem_budget_bytes:
        tb = max(8, (tb // 2) - (tb // 2) % 8)
    b_pad = _round_up(B, tb)
    nb = b_pad // tb
    vmem_limit = int(min(max(1.5 * vmem_bytes(tb), 16 * 2**20), 60 * 2**20))

    # ---- pad inputs (zero padding keeps the batch statistics exact; divisor is true B) ----
    xp = jnp.pad(x, ((0, b_pad - B), (0, d_in_p - d_in)))
    g1 = jnp.pad(gamma1.astype(f32), (0, d_in_p - d_in)).reshape(1, d_in_p)
    b1 = jnp.pad(beta1.astype(f32), (0, d_in_p - d_in)).reshape(1, d_in_p)
    w1p = jnp.pad(w1_t.astype(f32),
                  ((0, d_in_p - d_in), (0, d_bot_p - d_bot))).astype(matmul_dtype)

    # ================= kernel 1: BN1 stats + bottleneck =================
    def bottleneck_kernel(x_ref, g1_ref, b1_ref, w1_ref, h_ref, hstats_ref,
                          xstat_ref, bn1_ref):
        p = pl.program_id(0)   # 0: accumulate x stats, 1: normalize + matmul
        t = pl.program_id(1)   # batch tile

        @pl.when(p == 0)
        def _accumulate_x_stats():
            @pl.when(t == 0)
            def _():
                xstat_ref[...] = jnp.zeros_like(xstat_ref)
            xv = x_ref[...].astype(jnp.float32)
            xstat_ref[0:1, :] += jnp.sum(xv, axis=0, keepdims=True)
            xstat_ref[1:2, :] += jnp.sum(xv * xv, axis=0, keepdims=True)

        @pl.when(p == 1)
        def _bottleneck():
            @pl.when(t == 0)
            def _finalize_bn1():
                inv_n = 1.0 / B                       # true batch size (padding rows are zero)
                mean1 = xstat_ref[0:1, :] * inv_n
                var1 = jnp.maximum(xstat_ref[1:2, :] * inv_n - mean1 * mean1, 0.0)
                scale1 = g1_ref[...] * lax.rsqrt(var1 + EPS)
                bn1_ref[0:1, :] = scale1
                bn1_ref[1:2, :] = b1_ref[...] - mean1 * scale1
                hstats_ref[...] = jnp.zeros_like(hstats_ref)

            xv = x_ref[...].astype(jnp.float32)
            y = xv * bn1_ref[0:1, :] + bn1_ref[1:2, :]
            y = jnp.maximum(y, LEAKY_SLOPE * y)       # LeakyReLU(0.1), single VALU op
            if b_pad != B:                            # zero padded rows so BN2 stats stay exact
                rows = t * tb + lax.broadcasted_iota(jnp.int32, (tb, 1), 0)
                y = jnp.where(rows < B, y, 0.0)
            h = jnp.dot(y.astype(matmul_dtype), w1_ref[...],
                        preferred_element_type=jnp.float32)
            h_ref[...] = h.astype(h_ref.dtype)
            hstats_ref[0:1, :] += jnp.sum(h, axis=0, keepdims=True)
            hstats_ref[1:2, :] += jnp.sum(h * h, axis=0, keepdims=True)

    flops_a = 2 * b_pad * d_in_p * d_bot_p + 8 * b_pad * d_in_p
    bytes_a = (2 * b_pad * d_in_p * x_bytes + d_in_p * d_bot_p * mm_bytes
               + b_pad * d_bot_p * mm_bytes + 4 * d_in_p * 4 + 2 * d_bot_p * 4)

    h, hstats = pl.pallas_call(
        bottleneck_kernel,
        grid=(2, nb),
        in_specs=[
            pl.BlockSpec((tb, d_in_p), lambda p, t: (t, 0)),
            pl.BlockSpec((1, d_in_p), lambda p, t: (0, 0)),
            pl.BlockSpec((1, d_in_p), lambda p, t: (0, 0)),
            pl.BlockSpec((d_in_p, d_bot_p), lambda p, t: (0, 0)),   # W1^T resident
        ],
        out_specs=[
            # h is only produced in phase 1; keep the block index pinned during phase 0
            # so no garbage write-backs happen.
            pl.BlockSpec((tb, d_bot_p), lambda p, t: (jnp.where(p == 1, t, 0), 0)),
            pl.BlockSpec((2, d_bot_p), lambda p, t: (0, 0)),        # resident accumulator
        ],
        out_shape=[
            jax.ShapeDtypeStruct((b_pad, d_bot_p), matmul_dtype),
            jax.ShapeDtypeStruct((2, d_bot_p), jnp.float32),
        ],
        scratch_shapes=[
            pltpu.VMEM((2, d_in_p), jnp.float32),   # running sum / sumsq of x
            pltpu.VMEM((2, d_in_p), jnp.float32),   # finalized BN1 scale / shift
        ],
        compiler_params=pltpu.CompilerParams(
            dimension_semantics=("arbitrary", "arbitrary"),
            vmem_limit_bytes=vmem_limit),
        cost_estimate=pl.CostEstimate(flops=int(flops_a), transcendentals=int(2 * d_in_p),
                                      bytes_accessed=int(bytes_a)),
    )(xp, g1, b1, w1p)

    # ---- tiny per-feature glue: finalize BN2 and fold it into the classifier ----
    inv_n = 1.0 / B
    mean2 = hstats[0:1, :] * inv_n
    var2 = jnp.maximum(hstats[1:2, :] * inv_n - mean2 * mean2, 0.0)
    g2 = jnp.pad(gamma2.astype(f32), (0, d_bot_p - d_bot)).reshape(1, d_bot_p)
    b2 = jnp.pad(beta2.astype(f32), (0, d_bot_p - d_bot)).reshape(1, d_bot_p)
    scale2 = g2 * lax.rsqrt(var2 + EPS)                  # (1, d_bot_p)
    shift2 = b2 - mean2 * scale2                         # (1, d_bot_p)
    w2p = jnp.pad(w2_t.astype(f32), ((0, d_bot_p - d_bot), (0, c_p - c)))
    w2f = (scale2.reshape(d_bot_p, 1) * w2p).astype(matmul_dtype)   # BN2 folded into W2
    bias = shift2 @ w2p                                  # (1, c_p), f32

    # ================= kernel 2: classifier (BN2 pre-folded) =================
    def classifier_kernel(h_ref, w2_ref, bias_ref, out_ref):
        acc = jnp.dot(h_ref[...], w2_ref[...], preferred_element_type=jnp.float32)
        out_ref[...] = (acc + bias_ref[...]).astype(out_ref.dtype)

    flops_b = 2 * b_pad * d_bot_p * c_p + b_pad * c_p
    bytes_b = (b_pad * d_bot_p * mm_bytes + d_bot_p * c_p * mm_bytes
               + c_p * 4 + b_pad * c_p * out_bytes)

    out = pl.pallas_call(
        classifier_kernel,
        grid=(nb,),
        in_specs=[
            pl.BlockSpec((tb, d_bot_p), lambda i: (i, 0)),
            pl.BlockSpec((d_bot_p, c_p), lambda i: (0, 0)),   # folded W2 resident
            pl.BlockSpec((1, c_p), lambda i: (0, 0)),
        ],
        out_specs=pl.BlockSpec((tb, c_p), lambda i: (i, 0)),  # lane-dense (128-multiple) stores
        out_shape=jax.ShapeDtypeStruct((b_pad, c_p), x.dtype),
        compiler_params=pltpu.CompilerParams(
            dimension_semantics=("parallel",),                # shards batch tiles across TCs
            vmem_limit_bytes=vmem_limit),
        cost_estimate=pl.CostEstimate(flops=int(flops_b), transcendentals=0,
                                      bytes_accessed=int(bytes_b)),
    )(h, w2f, bias)

    return out[:B, :c]


def reference_forward(x, gamma1, beta1, w1_t, gamma2, beta2, w2_t):
    """Pure-JAX reference replicating the PyTorch forward (training-mode BN)."""
    m1 = jnp.mean(x, axis=0, keepdims=True)
    v1 = jnp.mean((x - m1) ** 2, axis=0, keepdims=True)
    y = (x - m1) / jnp.sqrt(v1 + EPS) * gamma1 + beta1
    y = jnp.where(y >= 0, y, LEAKY_SLOPE * y)
    h = y @ w1_t
    m2 = jnp.mean(h, axis=0, keepdims=True)
    v2 = jnp.mean((h - m2) ** 2, axis=0, keepdims=True)
    h1 = (h - m2) / jnp.sqrt(v2 + EPS) * gamma2 + beta2
    return h1 @ w2_t


def make_params(key, input_dim, num_bottleneck, class_num):
    # weights_init_kaiming / weights_init_classifier:
    #   BN1d: gamma ~ N(1, 0.02), beta = 0
    #   add_block Linear: kaiming_normal fan_out -> std = sqrt(2 / out_features)
    #   classifier Linear: normal(std=0.001)
    kg1, kw1, kg2, kw2 = jax.random.split(key, 4)
    gamma1 = 1.0 + 0.02 * jax.random.normal(kg1, (input_dim,), dtype=jnp.float32)
    beta1 = jnp.zeros((input_dim,), dtype=jnp.float32)
    w1 = (2.0 / num_bottleneck) ** 0.5 * jax.random.normal(
        kw1, (num_bottleneck, input_dim), dtype=jnp.float32)
    gamma2 = 1.0 + 0.02 * jax.random.normal(kg2, (num_bottleneck,), dtype=jnp.float32)
    beta2 = jnp.zeros((num_bottleneck,), dtype=jnp.float32)
    w2 = 0.001 * jax.random.normal(kw2, (class_num, num_bottleneck), dtype=jnp.float32)
    return gamma1, beta1, w1.T, gamma2, beta2, w2.T


if __name__ == "__main__":
    key = jax.random.PRNGKey(0)
    k1, k2, k3, k4 = jax.random.split(key, 4)

    # Test 1: f32 MXU operands, ragged shapes -> exercises batch padding/masking and
    # feature lane-padding paths, multi-tile BN reduction (B=200, tile=128).
    B, d_in, d_bot, C = 200, 192, 96, 10
    x = jax.random.normal(k1, (B, d_in), dtype=jnp.float32)
    params = make_params(k2, d_in, d_bot, C)
    out = class_block_forward(x, *params, tile_b=128, matmul_dtype=jnp.float32)
    out = jax.block_until_ready(out)
    ref = reference_forward(x, *params)
    assert out.shape == (B, C)
    assert jnp.allclose(out, ref, atol=1e-4, rtol=1e-3), "Pallas f32 output mismatch"

    # Test 2: bf16 MXU operands (v6e/v7x fast path), 128-aligned shapes, 3 batch tiles.
    B, d_in, d_bot, C = 384, 256, 128, 16
    x = jax.random.normal(k3, (B, d_in), dtype=jnp.float32)
    params = make_params(k4, d_in, d_bot, C)
    out = class_block_forward(x, *params, tile_b=128, matmul_dtype=jnp.bfloat16)
    out = jax.block_until_ready(out)
    ref = reference_forward(x, *params)
    assert out.shape == (B, C)
    assert jnp.allclose(out, ref, atol=1e-3, rtol=2e-2), "Pallas bf16 output mismatch"

    print("KERNEL_OK")
</pallas_src>

<mosaic_0001>
module attributes {stable_mosaic.version = 11 : i64} {
  func.func @bottleneck_kernel(%arg0: i32, %arg1: i32, %arg2: memref<128x256xf32, #tpu.memory_space<vmem>>, %arg3: memref<1x256xf32, #tpu.memory_space<vmem>>, %arg4: memref<1x256xf32, #tpu.memory_space<vmem>>, %arg5: memref<256x128xf32, #tpu.memory_space<vmem>>, %arg6: memref<128x128xf32, #tpu.memory_space<vmem>>, %arg7: memref<2x128xf32, #tpu.memory_space<vmem>>, %arg8: memref<2x256xf32, #tpu.memory_space<vmem>>, %arg9: memref<2x256xf32, #tpu.memory_space<vmem>>) attributes {dimension_semantics = [#tpu.dimension_semantics<arbitrary>, #tpu.dimension_semantics<arbitrary>], iteration_bounds = array<i64: 2, 2>, scalar_prefetch = 0 : i64, scratch_operands = 2 : i64, tpu.core_type = #tpu.core_type<tc>, window_params = [{transform_indices = @transform_0, window_bounds = array<i64: 128, 256>}, {pipeline_mode = #tpu.pipeline_mode<synchronous>, transform_indices = @transform_1, window_bounds = array<i64: 1, 256>}, {pipeline_mode = #tpu.pipeline_mode<synchronous>, transform_indices = @transform_2, window_bounds = array<i64: 1, 256>}, {pipeline_mode = #tpu.pipeline_mode<synchronous>, transform_indices = @transform_3, window_bounds = array<i64: 256, 128>}, {transform_indices = @transform_4, window_bounds = array<i64: 128, 128>}, {pipeline_mode = #tpu.pipeline_mode<synchronous>, transform_indices = @transform_5, window_bounds = array<i64: 2, 128>}]} {
    %c0_i32 = arith.constant 0 : i32
    %0 = arith.cmpi eq, %arg0, %c0_i32 : i32
    %1 = arith.extui %0 : i1 to i32
    %c0_i32_0 = arith.constant 0 : i32
    %2 = arith.cmpi ne, %1, %c0_i32_0 : i32
    scf.if %2 {
      %c0_i32_2 = arith.constant 0 : i32
      %6 = arith.cmpi eq, %arg1, %c0_i32_2 : i32
      %7 = arith.extui %6 : i1 to i32
      %c0_i32_3 = arith.constant 0 : i32
      %8 = arith.cmpi ne, %7, %c0_i32_3 : i32
      scf.if %8 {
        %cst_13 = arith.constant 0.000000e+00 : f32
        %21 = vector.broadcast %cst_13 : f32 to vector<2x256xf32>
        %c0_14 = arith.constant 0 : index
        %c0_15 = arith.constant 0 : index
        %22 = vector.load %arg8[%c0_14, %c0_15] : memref<2x256xf32, #tpu.memory_space<vmem>>, vector<2x256xf32>
        tpu.vector_store %arg8[%c0_14, %c0_15], %21 {strides = array<i32>} : memref<2x256xf32, #tpu.memory_space<vmem>>, vector<2x256xf32>,
      } else {
      }
      %c0 = arith.constant 0 : index
      %c0_4 = arith.constant 0 : index
      %9 = vector.load %arg2[%c0, %c0_4] : memref<128x256xf32, #tpu.memory_space<vmem>>, vector<128x256xf32>
      %c0_5 = arith.constant 0 : index
      %c0_6 = arith.constant 0 : index
      %10 = vector.load %arg8[%c0_5, %c0_6] : memref<2x256xf32, #tpu.memory_space<vmem>>, vector<1x256xf32>
      %cst = arith.constant dense<0.000000e+00> : vector<256xf32>
      %11 = vector.multi_reduction <add>, %9, %cst [0] : vector<128x256xf32> to vector<256xf32>
      %12 = vector.shape_cast %11 : vector<256xf32> to vector<1x256xf32>
      %13 = arith.addf %10, %12 : vector<1x256xf32>
      %c0_7 = arith.constant 0 : index
      %c0_8 = arith.constant 0 : index
      %14 = vector.load %arg8[%c0_7, %c0_8] : memref<2x256xf32, #tpu.memory_space<vmem>>, vector<1x256xf32>
      tpu.vector_store %arg8[%c0_7, %c0_8], %13 {strides = array<i32>} : memref<2x256xf32, #tpu.memory_space<vmem>>, vector<1x256xf32>,
      %c1 = arith.constant 1 : index
      %c0_9 = arith.constant 0 : index
      %15 = vector.load %arg8[%c1, %c0_9] : memref<2x256xf32, #tpu.memory_space<vmem>>, vector<1x256xf32>
      %16 = arith.mulf %9, %9 : vector<128x256xf32>
      %cst_10 = arith.constant dense<0.000000e+00> : vector<256xf32>
      %17 = vector.multi_reduction <add>, %16, %cst_10 [0] : vector<128x256xf32> to vector<256xf32>
      %18 = vector.shape_cast %17 : vector<256xf32> to vector<1x256xf32>
      %19 = arith.addf %15, %18 : vector<1x256xf32>
      %c1_11 = arith.constant 1 : index
      %c0_12 = arith.constant 0 : index
      %20 = vector.load %arg8[%c1_11, %c0_12] : memref<2x256xf32, #tpu.memory_space<vmem>>, vector<1x256xf32>
      tpu.vector_store %arg8[%c1_11, %c0_12], %19 {strides = array<i32>} : memref<2x256xf32, #tpu.memory_space<vmem>>, vector<1x256xf32>,
    } else {
    }
    %c1_i32 = arith.constant 1 : i32
    %3 = arith.cmpi eq, %arg0, %c1_i32 : i32
    %4 = arith.extui %3 : i1 to i32
    %c0_i32_1 = arith.constant 0 : i32
    %5 = arith.cmpi ne, %4, %c0_i32_1 : i32
    scf.if %5 {
      %c0_i32_2 = arith.constant 0 : i32
      %6 = arith.cmpi eq, %arg1, %c0_i32_2 : i32
      %7 = arith.extui %6 : i1 to i32
      %c0_i32_3 = arith.constant 0 : i32
      %8 = arith.cmpi ne, %7, %c0_i32_3 : i32
      scf.if %8 {
        %c0_24 = arith.constant 0 : index
        %c0_25 = arith.constant 0 : index
        %43 = vector.load %arg8[%c0_24, %c0_25] : memref<2x256xf32, #tpu.memory_space<vmem>>, vector<1x256xf32>
        %cst_26 = arith.constant 5.000000e-03 : f32
        %44 = vector.broadcast %cst_26 : f32 to vector<1x256xf32>
        %45 = arith.mulf %43, %44 : vector<1x256xf32>
        %c1_27 = arith.constant 1 : index
        %c0_28 = arith.constant 0 : index
        %46 = vector.load %arg8[%c1_27, %c0_28] : memref<2x256xf32, #tpu.memory_space<vmem>>, vector<1x256xf32>
        %cst_29 = arith.constant 5.000000e-03 : f32
        %47 = vector.broadcast %cst_29 : f32 to vector<1x256xf32>
        %48 = arith.mulf %46, %47 : vector<1x256xf32>
        %49 = arith.mulf %45, %45 : vector<1x256xf32>
        %50 = arith.subf %48, %49 : vector<1x256xf32>
        %cst_30 = arith.constant 0.000000e+00 : f32
        %51 = vector.broadcast %cst_30 : f32 to vector<1x256xf32>
        %52 = arith.maximumf %50, %51 : vector<1x256xf32>
        %c0_31 = arith.constant 0 : index
        %c0_32 = arith.constant 0 : index
        %53 = vector.load %arg3[%c0_31, %c0_32] : memref<1x256xf32, #tpu.memory_space<vmem>>, vector<1x256xf32>
        %cst_33 = arith.constant 9.99999974E-6 : f32
        %54 = vector.broadcast %cst_33 : f32 to vector<1x256xf32>
        %55 = arith.addf %52, %54 : vector<1x256xf32>
        %56 = math.rsqrt %55 : vector<1x256xf32>
        %57 = arith.mulf %53, %56 : vector<1x256xf32>
        %c0_34 = arith.constant 0 : index
        %c0_35 = arith.constant 0 : index
        %58 = vector.load %arg9[%c0_34, %c0_35] : memref<2x256xf32, #tpu.memory_space<vmem>>, vector<1x256xf32>
        tpu.vector_store %arg9[%c0_34, %c0_35], %57 {strides = array<i32>} : memref<2x256xf32, #tpu.memory_space<vmem>>, vector<1x256xf32>,
        %c0_36 = arith.constant 0 : index
        %c0_37 = arith.constant 0 : index
        %59 = vector.load %arg4[%c0_36, %c0_37] : memref<1x256xf32, #tpu.memory_space<vmem>>, vector<1x256xf32>
        %60 = arith.mulf %45, %57 : vector<1x256xf32>
        %61 = arith.subf %59, %60 : vector<1x256xf32>
        %c1_38 = arith.constant 1 : index
        %c0_39 = arith.constant 0 : index
        %62 = vector.load %arg9[%c1_38, %c0_39] : memref<2x256xf32, #tpu.memory_space<vmem>>, vector<1x256xf32>
        tpu.vector_store %arg9[%c1_38, %c0_39], %61 {strides = array<i32>} : memref<2x256xf32, #tpu.memory_space<vmem>>, vector<1x256xf32>,
        %cst_40 = arith.constant 0.000000e+00 : f32
        %63 = vector.broadcast %cst_40 : f32 to vector<2x128xf32>
        %c0_41 = arith.constant 0 : index
        %c0_42 = arith.constant 0 : index
        %64 = vector.load %arg7[%c0_41, %c0_42] : memref<2x128xf32, #tpu.memory_space<vmem>>, vector<2x128xf32>
        tpu.vector_store %arg7[%c0_41, %c0_42], %63 {strides = array<i32>} : memref<2x128xf32, #tpu.memory_space<vmem>>, vector<2x128xf32>,
      } else {
      }
      %c0 = arith.constant 0 : index
      %c0_4 = arith.constant 0 : index
      %9 = vector.load %arg2[%c0, %c0_4] : memref<128x256xf32, #tpu.memory_space<vmem>>, vector<128x256xf32>
      %c0_5 = arith.constant 0 : index
      %c0_6 = arith.constant 0 : index
      %10 = vector.load %arg9[%c0_5, %c0_6] : memref<2x256xf32, #tpu.memory_space<vmem>>, vector<1x256xf32>
      %11 = vector.broadcast %10 : vector<1x256xf32> to vector<128x256xf32>
      %12 = arith.mulf %9, %11 : vector<128x256xf32>
      %c1 = arith.constant 1 : index
      %c0_7 = arith.constant 0 : index
      %13 = vector.load %arg9[%c1, %c0_7] : memref<2x256xf32, #tpu.memory_space<vmem>>, vector<1x256xf32>
      %14 = vector.broadcast %13 : vector<1x256xf32> to vector<128x256xf32>
      %15 = arith.addf %12, %14 : vector<128x256xf32>
      %cst = arith.constant 1.000000e-01 : f32
      %16 = vector.broadcast %cst : f32 to vector<128x256xf32>
      %17 = arith.mulf %16, %15 : vector<128x256xf32>
      %18 = arith.maximumf %15, %17 : vector<128x256xf32>
      %c128_i32 = arith.constant 128 : i32
      %19 = arith.muli %arg1, %c128_i32 : i32
      %20 = tpu.iota {dimensions = array<i32: 0>} : vector<128x1xi32>
      %21 = vector.broadcast %19 : i32 to vector<128x1xi32>
      %22 = arith.addi %21, %20 : vector<128x1xi32>
      %c200_i32 = arith.constant 200 : i32
      %23 = vector.broadcast %c200_i32 : i32 to vector<128x1xi32>
      %24 = arith.cmpi slt, %22, %23 : vector<128x1xi32>
      %cst_8 = arith.constant 0.000000e+00 : f32
      %25 = vector.shape_cast %24 : vector<128x1xi1> to vector<128x1xi1>
      %26 = vector.broadcast %25 : vector<128x1xi1> to vector<128x256xi1>
      %27 = vector.broadcast %cst_8 : f32 to vector<128x256xf32>
      %28 = arith.select %26, %18, %27 : vector<128x256xi1>, vector<128x256xf32>
      %c0_9 = arith.constant 0 : index
      %c0_10 = arith.constant 0 : index
      %29 = vector.load %arg5[%c0_9, %c0_10] : memref<256x128xf32, #tpu.memory_space<vmem>>, vector<256x128xf32>
      %cst_11 = arith.constant dense<0.000000e+00> : vector<128x128xf32>
      %30 = tpu.matmul %28, %29, %cst_11 {dimension_numbers = #tpu.dot_dimension_numbers<[1], [0], [0], [1], [0, 0, 1, 1], [], []>} : vector<128x256xf32>, vector<256x128xf32>, vector<128x128xf32> -> vector<128x128xf32>
      %c0_12 = arith.constant 0 : index
      %c0_13 = arith.constant 0 : index
      %31 = vector.load %arg6[%c0_12, %c0_13] : memref<128x128xf32, #tpu.memory_space<vmem>>, vector<128x128xf32>
      tpu.vector_store %arg6[%c0_12, %c0_13], %30 {strides = array<i32>} : memref<128x128xf32, #tpu.memory_space<vmem>>, vector<128x128xf32>,
      %c0_14 = arith.constant 0 : index
      %c0_15 = arith.constant 0 : index
      %32 = vector.load %arg7[%c0_14, %c0_15] : memref<2x128xf32, #tpu.memory_space<vmem>>, vector<1x128xf32>
      %cst_16 = arith.constant dense<0.000000e+00> : vector<128xf32>
      %33 = vector.multi_reduction <add>, %30, %cst_16 [0] : vector<128x128xf32> to vector<128xf32>
      %34 = vector.shape_cast %33 : vector<128xf32> to vector<1x128xf32>
      %35 = arith.addf %32, %34 : vector<1x128xf32>
      %c0_17 = arith.constant 0 : index
      %c0_18 = arith.constant 0 : index
      %36 = vector.load %arg7[%c0_17, %c0_18] : memref<2x128xf32, #tpu.memory_space<vmem>>, vector<1x128xf32>
      tpu.vector_store %arg7[%c0_17, %c0_18], %35 {strides = array<i32>} : memref<2x128xf32, #tpu.memory_space<vmem>>, vector<1x128xf32>,
      %c1_19 = arith.constant 1 : index
      %c0_20 = arith.constant 0 : index
      %37 = vector.load %arg7[%c1_19, %c0_20] : memref<2x128xf32, #tpu.memory_space<vmem>>, vector<1x128xf32>
      %38 = arith.mulf %30, %30 : vector<128x128xf32>
      %cst_21 = arith.constant dense<0.000000e+00> : vector<128xf32>
      %39 = vector.multi_reduction <add>, %38, %cst_21 [0] : vector<128x128xf32> to vector<128xf32>
      %40 = vector.shape_cast %39 : vector<128xf32> to vector<1x128xf32>
      %41 = arith.addf %37, %40 : vector<1x128xf32>
      %c1_22 = arith.constant 1 : index
      %c0_23 = arith.constant 0 : index
      %42 = vector.load %arg7[%c1_22, %c0_23] : memref<2x128xf32, #tpu.memory_space<vmem>>, vector<1x128xf32>
      tpu.vector_store %arg7[%c1_22, %c0_23], %41 {strides = array<i32>} : memref<2x128xf32, #tpu.memory_space<vmem>>, vector<1x128xf32>,
    } else {
    }
    return
  }
  func.func @transform_0(%arg0: i32, %arg1: i32) -> (i32, i32) {
    %c0_i32 = arith.constant 0 : i32
    %c0_i32_0 = arith.constant 0 : i32
    return %arg1, %c0_i32 : i32, i32
  }
  func.func @transform_1(%arg0: i32, %arg1: i32) -> (i32, i32) {
    %c0_i32 = arith.constant 0 : i32
    %c0_i32_0 = arith.constant 0 : i32
    %c0_i32_1 = arith.constant 0 : i32
    return %c0_i32, %c0_i32_0 : i32, i32
  }
  func.func @transform_2(%arg0: i32, %arg1: i32) -> (i32, i32) {
    %c0_i32 = arith.constant 0 : i32
    %c0_i32_0 = arith.constant 0 : i32
    %c0_i32_1 = arith.constant 0 : i32
    return %c0_i32, %c0_i32_0 : i32, i32
  }
  func.func @transform_3(%arg0: i32, %arg1: i32) -> (i32, i32) {
    %c0_i32 = arith.constant 0 : i32
    %c0_i32_0 = arith.constant 0 : i32
    %c0_i32_1 = arith.constant 0 : i32
    return %c0_i32, %c0_i32_0 : i32, i32
  }
  func.func @transform_4(%arg0: i32, %arg1: i32) -> (i32, i32) {
    %c1_i32 = arith.constant 1 : i32
    %0 = arith.cmpi eq, %arg0, %c1_i32 : i32
    %c0_i32 = arith.constant 0 : i32
    %1 = arith.select %0, %arg1, %c0_i32 : i32
    %c0_i32_0 = arith.constant 0 : i32
    %c0_i32_1 = arith.constant 0 : i32
    return %1, %c0_i32_0 : i32, i32
  }
  func.func @transform_5(%arg0: i32, %arg1: i32) -> (i32, i32) {
    %c0_i32 = arith.constant 0 : i32
    %c0_i32_0 = arith.constant 0 : i32
    %c0_i32_1 = arith.constant 0 : i32
    return %c0_i32, %c0_i32_0 : i32, i32
  }
}

</mosaic_0001>

<bundles_post_ra>
// kernel: tpu_custom_call.1
= control target key start
LH: loop header
LB: loop body
LE: loop exit
PB: predicated region body
PF: predicated region fallthrough
CT: control target
= control target key end

     0   :  { %s2500_s0 = inlined_call_operand.hbm [shape: f32[256,256], index: 0, kind: input, shape index: {}]   ;;  %s2501_s1 = inlined_call_operand.hbm [shape: f32[1,256], index: 1, kind: input, shape index: {}]   ;;  %s2502_s2 = inlined_call_operand.vmem [shape: f32[1,256], index: 2, kind: input, shape index: {}]   ;;  %s2503_s3 = inlined_call_operand.hbm [shape: f32[256,128], index: 3, kind: input, shape index: {}]   ;;  %s2504_s4 = inlined_call_operand.hbm [shape: f32[256,128], index: 4, kind: output, shape index: {0}]   ;;  %s2505_s5 = inlined_call_operand.hbm [shape: f32[2,128], index: 5, kind: output, shape index: {1}]  }
   0x1   :  { %2525 = sst [smem:[#allocation25_spill]] %s2501_s1 }
   0x2   :  { %2526 = sst [smem:[#allocation26_spill]] %s2503_s3 }
   0x3   :  { %2527 = sst [smem:[#allocation27_spill]] %s2504_s4 }
   0x4   :  { %2528 = sst [smem:[#allocation28_spill]] %s2505_s5 }
   0x5   :  { %11 = vsyncpa [#allocation5], 0 }
   0x6   :  { %13 = vsyncpa [#allocation5 + $0x1], 0 }
   0x7   :  { %14 = vsyncpa [#allocation8], 0 }
   0x8   :  { %15 = vsyncpa [#allocation6], 0 }
   0x9   :  { %17 = vsyncpa [#allocation6 + $0x1], 0 }
   0xa   :  { %18 = vsyncpa [#allocation12], 0  ;;  %s1816_s18 = smov 0   ;;  %s1818_s19 = smov 0  }
   0xb   :  { %s1820_s20 = smov 0   ;;  %s1822_s21 = smov 0  }
   0xc   :  { %s1824_s22 = smov 0   ;;  %s1826_s23 = smov 0  }
   0xd   :  { %s1828_s24 = smov 0   ;;  %s1830_s25 = smov 0  }
   0xe   :  { %s1832_s26 = smov 0   ;;  %s1834_s27 = smov 0  }
   0xf   :  { %s1836_s28 = smov 0  }
  0x10 LB: > { %2529 = sst [smem:[#allocation17_spill]] %s1730_s18  ;;  %s1223_s29 = sadd.s32 4294967295, %s1770_s28   ;;  %s1770_s28 = sphi %s1836_s28, %s24_s28   ;;  %s1766_s27 = sphi %s1834_s27, %s2565_s27   ;;  %s1762_s26 = sphi %s1832_s26, %s2573_s26   ;;  %s1758_s25 = sphi %s1830_s25, %s2563_s25   ;;  %s1754_s24 = sphi %s1828_s24, %s2572_s24   ;;  %s1750_s23 = sphi %s1826_s23, %s2571_s23   ;;  %s1746_s22 = sphi %s1824_s22, %s2570_s22   ;;  %s1742_s21 = sphi %s1822_s21, %s2569_s21   ;;  %s1738_s20 = sphi %s1820_s20, %s2568_s20   ;;  %s1734_s19 = sphi %s1818_s19, %s2567_s19   ;;  %s1730_s18 = sphi %s1816_s18, %s2566_s18  }
  0x11   : > { %2530 = sst [smem:[#allocation18_spill]] %s1766_s27  ;;  %s1224_s30 = sadd.s32 4294967294, %s1770_s28  }
  0x12   : > { %2531 = sst [smem:[#allocation19_spill]] %s1770_s28  ;;  %p50_p0 = scmp.ne.s32.totalorder %s1750_s23, %s1746_s22 }
  0x13   : > { %p51_p1 = scmp.eq.s32.totalorder %s1770_s28, 0  ;;  %p56_p2 = scmp.ne.s32.totalorder %s1746_s22, %s1742_s21 }
  0x14   : > { %p1876_p3 = scmp.eq.s32.totalorder %s1223_s29, 0  ;;  %p146_p5 = scmp.ne.s32.totalorder %s1738_s20, %s1734_s19 }
  0x15   : > { %p1881_p4 = por %p51_p1, %p50_p0  ;;  %p1893_p7 = scmp.eq.s32.totalorder %s1223_s29, 3 }
  0x16   : > { %s2532_s7 = scalar_select %p1876_p3, 1, 0 }
  0x17   : > { %p1889_p6 = por %p1876_p3, %p56_p2  ;;  %p152_p8 = scmp.ne.s32.totalorder %s1734_s19, %s1730_s18 }
  0x18   : > { %s2535_s11 = scalar_select %p1893_p7, 1, 0 }
  0x19   : > { %s2534_s10 = scalar_select %p1889_p6, 1, 0 }
  0x1a   : > { %2536 = sst [smem:[#allocation20_spill]] %s2535_s11  ;;  %p153_p9 = scmp.eq.s32.totalorder %s1224_s30, 3 }
  0x1b   : > { %p1901_p10 = por %p1893_p7, %p146_p5  ;;  %p1225_p11 = scmp.ge.s32.totalorder %s1770_s28, 1 }
  0x1c   : > { %p1906_p12 = por %p153_p9, %p152_p8  ;;  %p181_p13 = scmp.lt.s32.totalorder %s1770_s28, 5 }
  0x1d   : > { %s2537_s12 = scalar_select %p1901_p10, 1, 0 }
  0x1e   : > { %s2539_s13 = scalar_select %p1906_p12, 1, 0 }
  0x1f   : > { %2538 = sst [smem:[#allocation21_spill]] %s2537_s12  ;;  %p1911_p0 = pnand %p1225_p11, %p181_p13 }
  0x20   : > { %2540 = sst [smem:[#allocation22_spill]] %s2539_s13  ;;  %s1772_s15 = smov [#allocation7]  }
  0x21   : > { %s2541_s14 = scalar_select %p1911_p0, 1, 0 }
  0x22   : > { %s194_s16 = sshll.u32 %s1772_s15, 4  ;;  %p1413_p1 = pneg %p1911_p0  ;;  %s195_s16 = int_to_ptr.vmem [resolvable:$true] %s194_s16 }
  0x23   : > { %p1430_p2 = scmp.lt.s32.totalorder %s1770_s28, 4  ;;  %s1773_s29 = smov [#allocation9]  }
  0x24   : > { %p1920_p5 = pnand %p1413_p1, %p1876_p3  ;;  %s207_s30 = sshll.u32 %s1773_s29, 4  ;;  %s208_s30 = int_to_ptr.vmem [resolvable:$true] %s207_s30 }
  0x25   : > { %p1926_p8 = pnand %p1430_p2, %p1881_p4  ;;  %s1549_s15 = scalar_lea.vmem %s195_s16, 32 }
  0x26   : > { %p1540_p9 = pneg %p1920_p5  ;;  %p1550_p11 = scmp.ne.s32.totalorder %s195_s16, %s1549_s15 }
  0x27   : > { %p1557_p12 = scmp.lt.s32.totalorder %s195_s16, %s195_s16  ;;  %p1558_p7 = scmp.lt.s32.totalorder %s1549_s15, %s1549_s15 }
  0x28   : > { %p1552_p13 = pnand %p1550_p11, %p1540_p9 }
  0x29   : > { %p1559_p10 = por %p1558_p7, %p1557_p12 }
  0x2a   : > { %p1553_p1 = pneg %p1552_p13 }
  0x2c   : > { %p1560_p3 = pnand %p1559_p10, %p1553_p1 }
  0x2e   : > { %1563 = shalt.err (!%p1560_p3)
}
  0x2f   : > { %s2544_s1 = sld [smem:[#allocation25_spill]]  ;;  %s1575_s29 = scalar_lea.vmem %s208_s30, 4096 }
  0x30   : > { %p1576_p4 = scmp.ne.s32.totalorder %s208_s30, %s1575_s29  ;;  %p1583_p13 = scmp.lt.s32.totalorder %s208_s30, %s208_s30 }
  0x31   : > { %p1584_p6 = scmp.lt.s32.totalorder %s1575_s29, %s1575_s29 }
  0x32   : > { %p1578_p2 = pnand %p1576_p4, %p1540_p9 }
  0x33   : > { %p1585_p0 = por %p1584_p6, %p1583_p13 }
  0x34   : > { %p1579_p11 = pneg %p1578_p2 }
  0x35   : > { %1416 = dma.hbm_to_vmem [thread:$0]  (!%p1920_p5), %s2544_s1, 32, %s195_s16, [#allocation8]  }
  0x36   : > { %p1586_p7 = pnand %p1585_p0, %p1579_p11 }
  0x38   : > { %1589 = shalt.err (!%p1586_p7)
}
  0x39   : > { %s1774_s15 = smov 128   ;;  %s1775_s8 = smov 8  }
  0x3a   : > { %s2545_s3 = sld [smem:[#allocation26_spill]]  ;;  %s33_s29 = sadd.s32 1, %s1762_s26 }
  0x3b   : > { %p34_p3 = scmp.ge.s32.totalorder %s33_s29, 2  ;;  %s36_s6 = sadd.s32 1, %s1766_s27 }
  0x3c   : > { %p129_p6 = scmp.eq.s32.totalorder %s1766_s27, 1  ;;  %s221_s1 = sand.u32 1, %s1750_s23  }
  0x3d   : > { %s2575_s29 = smov (%p34_p3, %s33_s29), 0  ;;  %s2577_s6 = smov (!%p34_p3, %s36_s6), %s1766_s27 }
  0x3e   : > { %2546 = sst [smem:[#allocation23_spill]] %s2575_s29  ;;  %s40_s13 = ssub.s32 %s1762_s26, %s2575_s29 }
  0x3f   : > { %p38_p10 = scmp.ge.s32.totalorder %s2577_s6, 2  ;;  %p41_p12 = scmp.eq.s32.totalorder %s40_s13, 0 }
  0x40   : > { %1419 = dma.hbm_to_vmem [thread:$0]  (!%p1920_p5), %s2545_s3, 4096, %s208_s30, [#allocation8], %s1774_s15, %s1774_s15, %s1775_s8  }
  0x41   : > { %s130_s17 = scalar_select %p129_p6, %s1762_s26, 0 }
  0x42   : > { %s2579_s6 = smov (%p38_p10, %s2577_s6), 0  ;;  %s2548_s30 = sadd.s32 1, %s1750_s23 }
  0x43   : > { %2547 = sst [smem:[#allocation24_spill]] %s2579_s6  ;;  %p131_p0 = scmp.eq.s32.totalorder %s2579_s6, 1 }
  0x44   : > { %s1963_s15 = scalar_select %p41_p12, %s1750_s23, %s2548_s30  }
  0x45   : > { %s1229_s8 = sshll.u32 %s221_s1, 8  ;;  %s1283_s16 = sshll.u32 %s1762_s26, 12 }
  0x46   : > { %s132_s9 = scalar_select %p131_p0, %s2575_s29, 0 }
  0x47   : > { %s232_s27 = scalar_lea.hbm %s2500_s0, %s1283_s16  ;;  %s225_s28 = scalar_lea.vmem [#allocation4], %s1229_s8 }
  0x48   : > { %s233_s5 = sshll.u32 %s225_s28, 4  ;;  %s133_s11 = ssub.s32 %s130_s17, %s132_s9  ;;  %s234_s5 = int_to_ptr.vmem [resolvable:$true] %s233_s5 }
  0x49   : > { %p134_p5 = scmp.eq.s32.totalorder %s133_s11, 0  ;;  %s2549_s13 = sadd.s32 1, %s1738_s20 }
  0x4a   : > { %s222_s12 = scalar_lea.sflag [#allocation5], %s221_s1  ;;  %p1592_p9 = pneg %p1926_p8 }
  0x4b   : > { %s1974_s4 = scalar_select %p134_p5, %s1738_s20, %s2549_s13  }
  0x4c   : > { %s1603_s30 = scalar_lea.vmem %s234_s5, 4096  ;;  %s1776_s6 = smov [#allocation4]  }
  0x4d   : > { %p1604_p1 = scmp.ne.s32.totalorder %s234_s5, %s1603_s30  ;;  %s1608_s29 = sshll.u32 %s1776_s6, 4  ;;  %s1609_s29 = int_to_ptr.vmem [resolvable:$false] %s1608_s29 }
  0x4e   : > { %s1610_s3 = scalar_lea.vmem %s1609_s29, 8192  ;;  %p1611_p11 = scmp.lt.s32.totalorder %s234_s5, %s1609_s29 }
  0x4f   : > { %p1606_p4 = pnand %p1604_p1, %p1592_p9  ;;  %p1612_p13 = scmp.lt.s32.totalorder %s1610_s3, %s1603_s30 }
  0x51   : > { %p1607_p2 = pneg %p1606_p4  ;;  %p1613_p7 = por %p1612_p13, %p1611_p11 }
  0x53   : > { %p1614_p3 = pnand %p1613_p7, %p1607_p2 }
  0x55   : > { %1617 = shalt.err (!%p1614_p3)
}
  0x56   : > { %s1777_s18 = smov 256   ;;  %s1778_s28 = smov 16  }
  0x57   : > { %1423 = dma.hbm_to_vmem [thread:$0]  (!%p1926_p8), %s232_s27, 4096, %s234_s5, %s222_s12, %s1777_s18, %s1777_s18, %s1778_s28  }
  0x58   : > { %p2550_p6 = scmp.ne.s32.totalorder %s2541_s14, 0 }
  0x59   : > { %s247_s1 = sand.u32 (!%p2550_p6), 1, %s1746_s22   ;;  %p2551_p10 = scmp.ne.s32.totalorder (!%p2550_p6), %s2534_s10, 0 }
  0x5a   : > { %245 = sbr.rel (%p2550_p6) target bundleno = 554 (0x22a), region = 36  ;;  %s1234_s11 = sshll.u32 (!%p2550_p6), %s247_s1, 8 }
  0x5b   : > { %s248_s6 = scalar_lea.sflag (!%p2550_p6), [#allocation5], %s247_s1  ;;  %s1983_s17 = scalar_lea.vmem (!%p2550_p6), [#allocation4], %s1234_s11 }
  0x5f   : > { %1713 = dma.done.wait (%p2551_p10), %s248_s6, 4096  }
  0x60   : > { %1715 = vsyncadd (%p2551_p10), %s248_s6, 4294963200  ;;  %p2552_p12 = scmp.ne.s32.totalorder %s2532_s7, 0 }
  0x62   : > { %1717 = dma.done.wait (%p2552_p12), [#allocation8], 4128  }
  0x63   : > { %1719 = vsyncadd (%p2552_p12), [#allocation8], 4294963168  ;;  %s281_s5 = sand.u32 1, %s1734_s19   ;;  %p1238_p8 = scmp.ne.s32.totalorder %s1758_s25, 0 }
  0x64   : > { %s1237_s27 = sshll.u32 %s281_s5, 7  ;;  %p1239_p0 = scmp.ne.s32.totalorder (!%p1238_p8), %s1754_s24, 0 }
  0x65   : > { %s1996_s12 = scalar_lea.vmem [#allocation10], %s1237_s27  ;;  %293 = sbr.rel (%p1238_p8) target bundleno = 168 (0xa8), region = 52 }
  0x6a   : > { %297 = sbr.rel (%p1239_p0) target bundleno = 113 (0x71), region = 56 }
  0x6f   : > { %v1779_v0 = vmov 0.0  }
  0x70   : > { %298 = vst [vmem:[#allocation2] sm:$0xf] %v1779_v0 }
  0x71 PF: > { %v299_v1 = vld [vmem:[%s1983_s17] sm:$0xff]  ;;  %v301_v2 = vld [vmem:[%s1983_s17 + $0x10] sm:$0xff]  ;;  %v300_v3 = vld [vmem:[%s1983_s17 + $0x8] sm:$0xff] }
  0x72   : > { %v302_v4 = vld [vmem:[%s1983_s17 + $0x18] sm:$0xff]  ;;  %v332_v5 = vadd.f32 %v301_v2, %v299_v1  ;;  %v303_v6 = vld [vmem:[%s1983_s17 + $0x20] sm:$0xff]  ;;  %v304_v8 = vld [vmem:[%s1983_s17 + $0x28] sm:$0xff]  ;;  %v400_v20 = vmul.f32 %v299_v1, %v299_v1  ;;  %v401_v23 = vmul.f32 %v300_v3, %v300_v3  ;;  %v402_v24 = vmul.f32 %v301_v2, %v301_v2 }
  0x73   : > { %v353_v7 = vadd.f32 %v302_v4, %v300_v3  ;;  %v305_v10 = vld [vmem:[%s1983_s17 + $0x30] sm:$0xff]  ;;  %v306_v12 = vld [vmem:[%s1983_s17 + $0x38] sm:$0xff]  ;;  %v307_v14 = vld [vmem:[%s1983_s17 + $0x40] sm:$0xff]  ;;  %v403_v25 = vmul.f32 %v302_v4, %v302_v4  ;;  %v404_v30 = vmul.f32 %v303_v6, %v303_v6  ;;  %v405_v31 = vmul.f32 %v304_v8, %v304_v8 }
  0x74   : > { %v333_v9 = vadd.f32 %v332_v5, %v303_v6  ;;  %v308_v16 = vld [vmem:[%s1983_s17 + $0x48] sm:$0xff]  ;;  %v309_v18 = vld [vmem:[%s1983_s17 + $0x50] sm:$0xff]  ;;  %v310_v21 = vld [vmem:[%s1983_s17 + $0x58] sm:$0xff]  ;;  %v406_v34 = vmul.f32 %v305_v10, %v305_v10  ;;  %v407_v37 = vmul.f32 %v306_v12, %v306_v12  ;;  %v432_v38 = vadd.f32 %v402_v24, %v400_v20 }
  0x75   : > { %v354_v11 = vadd.f32 %v353_v7, %v304_v8  ;;  %v311_v26 = vld [vmem:[%s1983_s17 + $0x60] sm:$0xff]  ;;  %v312_v28 = vld [vmem:[%s1983_s17 + $0x68] sm:$0xff]  ;;  %v313_v32 = vld [vmem:[%s1983_s17 + $0x70] sm:$0xff]  ;;  %v453_v39 = vadd.f32 %v403_v25, %v401_v23  ;;  %v408_v42 = vmul.f32 %v307_v14, %v307_v14  ;;  %v409_v45 = vmul.f32 %v308_v16, %v308_v16 }
  0x76   : > { %v334_v13 = vadd.f32 %v333_v9, %v305_v10  ;;  %v314_v35 = vld [vmem:[%s1983_s17 + $0x78] sm:$0xff]  ;;  %v315_v40 = vld [vmem:[%s1983_s17 + $0x80] sm:$0xff]  ;;  %v316_v43 = vld [vmem:[%s1983_s17 + $0x88] sm:$0xff]  ;;  %v433_v46 = vadd.f32 %v432_v38, %v404_v30  ;;  %v410_v50 = vmul.f32 %v309_v18, %v309_v18  ;;  %v411_v53 = vmul.f32 %v310_v21, %v310_v21 }
  0x77   : > { %v355_v15 = vadd.f32 %v354_v11, %v306_v12  ;;  %v454_v47 = vadd.f32 %v453_v39, %v405_v31  ;;  %v317_v48 = vld [vmem:[%s1983_s17 + $0x90] sm:$0xff]  ;;  %v318_v51 = vld [vmem:[%s1983_s17 + $0x98] sm:$0xff]  ;;  %v319_v56 = vld [vmem:[%s1983_s17 + $0xa0] sm:$0xff]  ;;  %v412_v58 = vmul.f32 %v311_v26, %v311_v26  ;;  %v413_v61 = vmul.f32 %v312_v28, %v312_v28 }
  0x78   : > { %v335_v17 = vadd.f32 %v334_v13, %v307_v14  ;;  %v434_v54 = vadd.f32 %v433_v46, %v406_v34  ;;  %v320_v59 = vld [vmem:[%s1983_s17 + $0xa8] sm:$0xff]  ;;  %v321_v0 = vld [vmem:[%s1983_s17 + $0xb0] sm:$0xff]  ;;  %v414_v2 = vmul.f32 %v313_v32, %v313_v32  ;;  %v322_v3 = vld [vmem:[%s1983_s17 + $0xb8] sm:$0xff]  ;;  %v415_v5 = vmul.f32 %v314_v35, %v314_v35 }
  0x79   : > { %v356_v19 = vadd.f32 %v355_v15, %v308_v16  ;;  %v455_v55 = vadd.f32 %v454_v47, %v407_v37  ;;  %v323_v8 = vld [vmem:[%s1983_s17 + $0xc0] sm:$0xff]  ;;  %v416_v10 = vmul.f32 %v315_v40, %v315_v40  ;;  %v324_v11 = vld [vmem:[%s1983_s17 + $0xc8] sm:$0xff]  ;;  %v417_v13 = vmul.f32 %v316_v43, %v316_v43  ;;  %v325_v16 = vld [vmem:[%s1983_s17 + $0xd0] sm:$0xff] }
  0x7a   : > { %v336_v22 = vadd.f32 %v335_v17, %v309_v18  ;;  %v435_v62 = vadd.f32 %v434_v54, %v408_v42  ;;  %v418_v18 = vmul.f32 %v317_v48, %v317_v48  ;;  %v327_v24 = vld [vmem:[%s1983_s17 + $0xe0] sm:$0xff]  ;;  %v422_v34 = vmul.f32 %v321_v0, %v321_v0 }
  0x7b   : > { %v357_v27 = vadd.f32 %v356_v19, %v310_v21  ;;  %v456_v63 = vadd.f32 %v455_v55, %v409_v45  ;;  %v326_v19 = vld [vmem:[%s1983_s17 + $0xd8] sm:$0xff]  ;;  %v419_v21 = vmul.f32 %v318_v51, %v318_v51  ;;  %v423_v37 = vmul.f32 %v322_v3, %v322_v3 }
  0x7c   : > { %v337_v29 = vadd.f32 %v336_v22, %v311_v26  ;;  %v436_v6 = vadd.f32 %v435_v62, %v410_v50  ;;  %v420_v26 = vmul.f32 %v319_v56, %v319_v56  ;;  %v426_v47 = vmul.f32 %v325_v16, %v325_v16 }
  0x7d   : > { %v358_v33 = vadd.f32 %v357_v27, %v312_v28  ;;  %v457_v7 = vadd.f32 %v456_v63, %v411_v53  ;;  %v328_v27 = vld [vmem:[%s1983_s17 + $0xe8] sm:$0xff]  ;;  %v1780_v53 = vmov 1966171168   ;;  %v380_v55 = vlaneseq }
  0x7e   : > { %v338_v36 = vadd.f32 %v337_v29, %v313_v32  ;;  %v437_v14 = vadd.f32 %v436_v6, %v412_v58  ;;  %v421_v29 = vmul.f32 %v320_v59, %v320_v59  ;;  %v329_v32 = vld [vmem:[%s1983_s17 + $0xf0] sm:$0xff]  ;;  %v378_v54 = vunpack.c.l.s4 %v1780_v53 }
  0x7f   : > { %v359_v41 = vadd.f32 %v358_v33, %v314_v35  ;;  %v458_v15 = vadd.f32 %v457_v7, %v413_v61  ;;  %v330_v35 = vld [vmem:[%s1983_s17 + $0xf8] sm:$0xff]  ;;  %v429_v58 = vmul.f32 %v328_v27, %v328_v27  ;;  %v430_v62 = vmul.f32 %v329_v32, %v329_v32 }
  0x80   : > { %v339_v44 = vadd.f32 %v338_v36, %v315_v40  ;;  %v438_v22 = vadd.f32 %v437_v14, %v414_v2  ;;  %vm395_vm0 = vcmp.lt.s32.totalorder %v380_v55, 256 }
  0x81   : > { %v360_v49 = vadd.f32 %v359_v41, %v316_v43  ;;  %v459_v23 = vadd.f32 %v458_v15, %v415_v5  ;;  %v424_v41 = vmul.f32 %v323_v8, %v323_v8  ;;  %v425_v43 = vmul.f32 %v324_v11, %v324_v11 }
  0x82   : > { %v340_v52 = vadd.f32 %v339_v44, %v317_v48  ;;  %v439_v30 = vadd.f32 %v438_v22, %v416_v10  ;;  %v381_v5 = vshrl.u32 %v380_v55, 7 }
  0x83   : > { %v361_v57 = vadd.f32 %v360_v49, %v318_v51  ;;  %v460_v31 = vadd.f32 %v459_v23, %v417_v13  ;;  %v427_v49 = vmul.f32 %v326_v19, %v326_v19 }
  0x84   : > { %v341_v60 = vadd.f32 %v340_v52, %v319_v56  ;;  %v440_v38 = vadd.f32 %v439_v30, %v418_v18  ;;  %v428_v56 = vmul.f32 %v327_v24, %v327_v24 }
  0x85   : > { %v362_v1 = vadd.f32 %v361_v57, %v320_v59  ;;  %v461_v39 = vadd.f32 %v460_v31, %v419_v21  ;;  %v331_v21 = vld [vmem:[#allocation2] ss:$2 sm:$0x3] }
  0x86   : > { %v342_v4 = vadd.f32 %v341_v60, %v321_v0  ;;  %v441_v44 = vadd.f32 %v440_v38, %v420_v26  ;;  %v431_v0 = vmul.f32 %v330_v35, %v330_v35 }
  0x87   : > { %v363_v9 = vadd.f32 %v362_v1, %v322_v3  ;;  %v462_v45 = vadd.f32 %v461_v39, %v421_v29 }
  0x88   : > { %v343_v12 = vadd.f32 %v342_v4, %v323_v8  ;;  %v442_v50 = vadd.f32 %v441_v44, %v422_v34  ;;  %v379_v4 = vunpack.c.0.s8 %v378_v54  ;;  %v399_v34 = vld [vmem:[#allocation2 + $0x1] ss:$2 sm:$0x3] }
  0x89   : > { %v364_v17 = vadd.f32 %v363_v9, %v324_v11  ;;  %v463_v51 = vadd.f32 %v462_v45, %v423_v37 }
  0x8a   : > { %v344_v20 = vadd.f32 %v343_v12, %v325_v16  ;;  %v443_v59 = vadd.f32 %v442_v50, %v424_v41  ;;  %v382_v14 = vsub.s32 %v379_v4, %v381_v5 }
  0x8b   : > { %v365_v25 = vadd.f32 %v364_v17, %v326_v19  ;;  %v464_v60 = vadd.f32 %v463_v51, %v425_v43 }
  0x8c   : > { %v345_v28 = vadd.f32 %v344_v20, %v327_v24  ;;  %v444_v1 = vadd.f32 %v443_v59, %v426_v47 }
  0x8d   : > { %v366_v33 = vadd.f32 %v365_v25, %v328_v27  ;;  %v465_v2 = vadd.f32 %v464_v60, %v427_v49 }
  0x8e   : > { %v346_v36 = vadd.f32 %v345_v28, %v329_v32  ;;  %v445_v7 = vadd.f32 %v444_v1, %v428_v56 }
  0x8f   : > { %v367_v40 = vadd.f32 %v366_v33, %v330_v35  ;;  %v466_v8 = vadd.f32 %v465_v2, %v429_v58 }
  0x90   : > { %v347_v42 = vrot.slane %v346_v36, 4  ;;  %v446_v11 = vadd.f32 %v445_v7, %v430_v62 }
  0x91   : > { %v368_v46 = vrot.slane %v367_v40, 4  ;;  %v467_v12 = vadd.f32 %v466_v8, %v431_v0 }
  0x92   : > { %v348_v48 = vadd.f32 %v347_v42, %v346_v36  ;;  %v447_v15 = vrot.slane %v446_v11, 4 }
  0x93   : > { %v369_v52 = vadd.f32 %v368_v46, %v367_v40  ;;  %v468_v16 = vrot.slane %v467_v12, 4 }
  0x94   : > { %v349_v57 = vrot.slane %v348_v48, 2  ;;  %v448_v18 = vadd.f32 %v447_v15, %v446_v11 }
  0x95   : > { %v370_v61 = vrot.slane %v369_v52, 2  ;;  %v469_v19 = vadd.f32 %v468_v16, %v467_v12 }
  0x96   : > { %v350_v63 = vadd.f32 %v349_v57, %v348_v48  ;;  %v449_v22 = vrot.slane %v448_v18, 2 }
  0x97   : > { %v371_v3 = vadd.f32 %v370_v61, %v369_v52  ;;  %v470_v23 = vrot.slane %v469_v19, 2 }
  0x98   : > { %v351_v6 = vrot.slane %v350_v63, 1  ;;  %v450_v25 = vadd.f32 %v449_v22, %v448_v18 }
  0x99   : > { %v372_v9 = vrot.slane %v371_v3, 1  ;;  %v471_v26 = vadd.f32 %v470_v23, %v469_v19 }
  0x9a   : > { %v352_v10 = vadd.f32 %v351_v6, %v350_v63  ;;  %v451_v28 = vrot.slane %v450_v25, 1 }
  0x9b   : > { %v373_v13 = vadd.f32 %v372_v9, %v371_v3  ;;  %v472_v29 = vrot.slane %v471_v26, 1 }
  0x9c   : > { %v452_v30 = vadd.f32 %v451_v28, %v450_v25 }
  0x9d   : > { %v376_v17 = vcombine.low %v352_v10, %v373_v13  ;;  %v473_v31 = vadd.f32 %v472_v29, %v471_v26 }
  0x9f   : > { %v383_v20 = vrot.slane %v376_v17, %v382_v14  ;;  %v476_v32 = vcombine.low %v452_v30, %v473_v31 }
  0xa1   : > { %v390_v24 = vrot.slane %v383_v20, %v382_v14  ;;  %v483_v33 = vrot.slane %v476_v32, %v382_v14 }
  0xa3   : > { %v392_v27 = vadd.f32 %v390_v24, %v331_v21  ;;  %v490_v35 = vrot.slane %v483_v33, %v382_v14 }
  0xa5   : > { %397 = vst.msk [vmem:[#allocation2] ss:$2 sm:$0x3] %vm395_vm0, %v392_v27  ;;  %v492_v36 = vadd.f32 %v490_v35, %v399_v34 }
  0xa7   : > { %493 = vst.msk [vmem:[#allocation2 + $0x1] ss:$2 sm:$0x3] %vm395_vm0, %v492_v36 }
  0xa8 PF: > { %p1240_p5 = scmp.ne.s32.totalorder %s1758_s25, 1 }
  0xa9   : > { %p1241_p9 = scmp.ne.s32.totalorder (!%p1240_p5), %s1754_s24, 0 }
  0xaa   : > { %497 = sbr.rel (%p1240_p5) target bundleno = 505 (0x1f9), region = 60 }
  0xaf   : > { %501 = sbr.rel (%p1241_p9) target bundleno = 212 (0xd4), region = 64 }
  0xb4   : > { %v502_v37 = vld [vmem:[#allocation2] ss:$2 sm:$0x3]  ;;  %v505_v38 = vld [vmem:[#allocation2 + $0x1] ss:$2 sm:$0x3]  ;;  %v514_v46 = vlaneseq }
  0xb5   : > { %v503_v39 = vmul.f32 0.005, %v502_v37  ;;  %v506_v40 = vmul.f32 0.005, %v505_v38  ;;  %v1781_v42 = vmov 0.0  }
  0xb6   : > { %524 = vst [vmem:[#allocation11] sm:$0x3] %v1781_v42  ;;  %v510_v47 = vld [vmem:[#allocation7] sm:$0x3]  ;;  %vm516_vm1 = vcmp.lt.s32.totalorder %v514_v46, 256 }
  0xb7   : > { %v507_v41 = vmul.f32 %v503_v39, %v503_v39  ;;  %v519_v50 = vld [vmem:[%s2502_s2] sm:$0x3] }
  0xb9   : > { %v508_v43 = vsub.f32 %v506_v40, %v507_v41 }
  0xbb   : > { %v509_v44 = vmax.f32 %v508_v43, 0.0 }
  0xbd   : > { %v511_v45 = vadd.f32 1e-05, %v509_v44 }
  0xbf   : > { %1536 = vrsqrt.f32 %v511_v45 }
  0xcc   : > { %v1537_v48 = vpop.eup %1536 }
  0xcd   : > { %v513_v49 = vmul.f32 %v1537_v48, %v510_v47 }
  0xcf   : > { %518 = vst.msk [vmem:[#allocation3] ss:$2 sm:$0x3] %vm516_vm1, %v513_v49  ;;  %v520_v51 = vmul.f32 %v513_v49, %v503_v39 }
  0xd1   : > { %v521_v52 = vsub.f32 %v519_v50, %v520_v51 }
  0xd3   : > { %523 = vst.msk [vmem:[#allocation3 + $0x1] ss:$2 sm:$0x3] %vm516_vm1, %v521_v52 }
  0xd4 PF: > { %v856_v53 = vld [vmem:[#allocation9 + $0xf8] sm:$0xff]  ;;  %v855_v55 = vld [vmem:[#allocation9 + $0xf0] sm:$0xff]  ;;  %v559_v56 = vlaneseq  ;;  %v854_v58 = vld [vmem:[#allocation9 + $0xe8] sm:$0xff]  ;;  %s1242_s14 = sshll.u32 %s1754_s24, 7 }
  0xd5   : > { %v840_v54 = vld [vmem:[#allocation9 + $0x78] sm:$0xff]  ;;  %1285 = vmatprep.subr.mxu0 %v856_v53  ;;  %v839_v57 = vld [vmem:[#allocation9 + $0x70] sm:$0xff]  ;;  %1365 = vmatprep.subr.mxu1 %v856_v53  ;;  %v838_v59 = vld [vmem:[#allocation9 + $0x68] sm:$0xff]  ;;  %v2043_v9 = vstv %s1242_s14 }
  0xd6   : > { %1286 = vmatpush3.msra.mxu0 %v840_v54  ;;  %1381 = vmatpush3.msra.mxu1 %v840_v54  ;;  %v853_v60 = vld [vmem:[#allocation9 + $0xe0] sm:$0xff]  ;;  %v2037_v61 = vshrl.u32 %v559_v56, 7  ;;  %v852_v63 = vld [vmem:[#allocation9 + $0xd8] sm:$0xff]  ;;  %v851_v1 = vld [vmem:[#allocation9 + $0xd0] sm:$0xff] }
  0xd7   : > { %1287 = vmatprep.subr.mxu0 %v855_v55  ;;  %1366 = vmatprep.subr.mxu1 %v855_v55  ;;  %v837_v62 = vld [vmem:[#allocation9 + $0x60] sm:$0xff]  ;;  %v836_v0 = vld [vmem:[#allocation9 + $0x58] sm:$0xff]  ;;  %v835_v4 = vld [vmem:[#allocation9 + $0x50] sm:$0xff] }
  0xd8   : > { %1288 = vmatpush3.msra.mxu0 %v839_v57  ;;  %1382 = vmatpush3.msra.mxu1 %v839_v57  ;;  %v561_v2 = vsub.s32 0, %v2037_v61  ;;  %v565_v3 = vsub.s32 1, %v2037_v61  ;;  %v850_v5 = vld [vmem:[#allocation9 + $0xc8] sm:$0xff]  ;;  %v849_v7 = vld [vmem:[#allocation9 + $0xc0] sm:$0xff]  ;;  %v713_v10 = vadd.s32 8, %v2037_v61  ;;  %v528_v16 = vld [vmem:[%s1983_s17 + $0x18] sm:$0xff]  ;;  %v2060_v22 = vadd.s32 %v2043_v9, %v2037_v61 }
  0xd9   : > { %1289 = vmatprep.subr.mxu0 %v854_v58  ;;  %1367 = vmatprep.subr.mxu1 %v854_v58  ;;  %v834_v6 = vld [vmem:[#allocation9 + $0x48] sm:$0xff]  ;;  %v557_v11 = vld [vmem:[#allocation3] ss:$2 sm:$0x3]  ;;  %v525_v15 = vld [vmem:[%s1983_s17] sm:$0xff]  ;;  %v714_v18 = vadd.s32 16, %v2037_v61 }
  0xda   : > { %1290 = vmatpush3.msra.mxu0 %v838_v59  ;;  %1383 = vmatpush3.msra.mxu1 %v838_v59  ;;  %v526_v8 = vld [vmem:[%s1983_s17 + $0x8] sm:$0xff]  ;;  %v602_v12 = vld [vmem:[#allocation3 + $0x1] ss:$2 sm:$0x3]  ;;  %v2046_v13 = vrot.slane %v557_v11, %v561_v2  ;;  %v2048_v14 = vrot.slane %v557_v11, %v565_v3  ;;  %v527_v17 = vld [vmem:[%s1983_s17 + $0x10] sm:$0xff]  ;;  %v715_v24 = vadd.s32 24, %v2037_v61  ;;  %v2069_v31 = vadd.s32 %v2043_v9, %v713_v10 }
  0xdb   : > { %1291 = vmatprep.subr.mxu0 %v853_v60  ;;  %1368 = vmatprep.subr.mxu1 %v853_v60  ;;  %v833_v19 = vld [vmem:[#allocation9 + $0x40] sm:$0xff]  ;;  %v2054_v20 = vrot.slane %v602_v12, %v561_v2  ;;  %v2056_v21 = vrot.slane %v602_v12, %v565_v3  ;;  %v848_v25 = vld [vmem:[#allocation9 + $0xb8] sm:$0xff]  ;;  %v720_v34 = vadd.s32 64, %v2037_v61  ;;  %v847_v35 = vld [vmem:[#allocation9 + $0xb0] sm:$0xff]  ;;  %v2076_v37 = vadd.s32 %v2043_v9, %v714_v18 }
  0xdc   : > { %1292 = vmatpush3.msra.mxu0 %v837_v62  ;;  %1384 = vmatpush3.msra.mxu1 %v837_v62  ;;  %v530_v23 = vld [vmem:[%s1983_s17 + $0x28] sm:$0xff]  ;;  %v570_v26 = vmul.f32 %v2048_v14, %v526_v8  ;;  %v569_v27 = vmul.f32 %v2046_v13, %v525_v15  ;;  %v572_v28 = vmul.f32 %v2048_v14, %v528_v16  ;;  %v529_v29 = vld [vmem:[%s1983_s17 + $0x20] sm:$0xff]  ;;  %v716_v38 = vadd.s32 32, %v2037_v61  ;;  %v831_v40 = vld [vmem:[#allocation9 + $0x30] sm:$0xff] }
  0xdd   : > { %1293 = vmatprep.subr.mxu0 %v852_v63  ;;  %1369 = vmatprep.subr.mxu1 %v852_v63  ;;  %v832_v30 = vld [vmem:[#allocation9 + $0x38] sm:$0xff]  ;;  %v571_v32 = vmul.f32 %v2046_v13, %v527_v17  ;;  %v574_v33 = vmul.f32 %v2048_v14, %v530_v23  ;;  %v721_v39 = vadd.s32 72, %v2037_v61  ;;  %v573_v41 = vmul.f32 %v2046_v13, %v529_v29  ;;  %v846_v45 = vld [vmem:[#allocation9 + $0xa8] sm:$0xff]  ;;  %v845_v51 = vld [vmem:[#allocation9 + $0xa0] sm:$0xff] }
  0xde   : > { %1294 = vmatpush3.msra.mxu0 %v836_v0  ;;  %1385 = vmatpush3.msra.mxu1 %v836_v0  ;;  %v615_v36 = vadd.f32 %v2056_v21, %v570_v26  ;;  %v2082_v42 = vadd.s32 %v2043_v9, %v715_v24  ;;  %v717_v43 = vadd.s32 40, %v2037_v61  ;;  %v722_v44 = vadd.s32 80, %v2037_v61  ;;  %v830_v50 = vld [vmem:[#allocation9 + $0x28] sm:$0xff]  ;;  %v829_v56 = vld [vmem:[#allocation9 + $0x20] sm:$0xff]  ;;  %v532_v58 = vld [vmem:[%s1983_s17 + $0x38] sm:$0xff] }
  0xdf   : > { %1295 = vmatprep.subr.mxu0 %v851_v1  ;;  %1370 = vmatprep.subr.mxu1 %v851_v1  ;;  %v2087_v47 = vadd.f32 %v2054_v20, %v569_v27  ;;  %v2090_v48 = vadd.f32 %v2056_v21, %v572_v28  ;;  %v718_v49 = vadd.s32 48, %v2037_v61  ;;  %vm745_vm2 = vcmp.lt.s32.totalorder %v2060_v22, 200  ;;  %v542_v54 = vld [vmem:[%s1983_s17 + $0x88] sm:$0xff]  ;;  %v541_v59 = vld [vmem:[%s1983_s17 + $0x80] sm:$0xff]  ;;  %v531_v1 = vld [vmem:[%s1983_s17 + $0x30] sm:$0xff] }
  0xe0   : > { %1296 = vmatpush3.msra.mxu0 %v835_v4  ;;  %1386 = vmatpush3.msra.mxu1 %v835_v4  ;;  %v647_v46 = vmul.f32 0.1, %v615_v36  ;;  %v2095_v52 = vadd.f32 %v2054_v20, %v571_v32  ;;  %v2098_v53 = vadd.f32 %v2056_v21, %v574_v33  ;;  %v2102_v55 = vadd.s32 %v2043_v9, %v720_v34  ;;  %v844_v63 = vld [vmem:[#allocation9 + $0x98] sm:$0xff]  ;;  %v534_v10 = vld [vmem:[%s1983_s17 + $0x48] sm:$0xff]  ;;  %v843_v23 = vld [vmem:[#allocation9 + $0x90] sm:$0xff] }
  0xe1   : > { %1297 = vmatprep.subr.mxu0 %v850_v5  ;;  %1371 = vmatprep.subr.mxu1 %v850_v5  ;;  %v2107_v60 = vadd.s32 %v2043_v9, %v716_v38  ;;  %v2110_v62 = vadd.s32 %v2043_v9, %v721_v39  ;;  %v2113_v0 = vadd.f32 %v2054_v20, %v573_v41  ;;  %v544_v2 = vld [vmem:[%s1983_s17 + $0x98] sm:$0xff]  ;;  %v2124_v5 = vadd.s32 88, %v2037_v61  ;;  %v533_v11 = vld [vmem:[%s1983_s17 + $0x40] sm:$0xff]  ;;  %v543_v27 = vld [vmem:[%s1983_s17 + $0x90] sm:$0xff] }
  0xe2   : > { %1298 = vmatpush3.msra.mxu0 %v834_v6  ;;  %1387 = vmatpush3.msra.mxu1 %v834_v6  ;;  %v679_v57 = vmax.f32 %v615_v36, %v647_v46  ;;  %v2118_v3 = vadd.s32 %v2043_v9, %v717_v43  ;;  %v2121_v4 = vadd.s32 %v2043_v9, %v722_v44  ;;  %v2129_v6 = vmul.f32 0.1, %v2087_v47  ;;  %v828_v15 = vld [vmem:[#allocation9 + $0x18] sm:$0xff]  ;;  %v827_v29 = vld [vmem:[#allocation9 + $0x10] sm:$0xff]  ;;  %v842_v36 = vld [vmem:[#allocation9 + $0x88] sm:$0xff] }
  0xe3   : > { %1299 = vmatprep.subr.mxu0 %v849_v7  ;;  %1372 = vmatprep.subr.mxu1 %v849_v7  ;;  %v2132_v7 = vmul.f32 0.1, %v2090_v48  ;;  %v586_v8 = vmul.f32 %v2048_v14, %v542_v54  ;;  %v2138_v12 = vadd.s32 %v2043_v9, %v718_v49  ;;  %vm746_vm3 = vcmp.lt.s32.totalorder %v2069_v31, 200  ;;  %v826_v43 = vld [vmem:[#allocation9 + $0x8] sm:$0xff]  ;;  %v841_v49 = vld [vmem:[#allocation9 + $0x80] sm:$0xff] }
  0xe4   : > { %1300 = vmatpush3.msra.mxu0 %v833_v19  ;;  %1388 = vmatpush3.msra.mxu1 %v833_v19  ;;  %v2142_v16 = vmul.f32 0.1, %v2095_v52  ;;  %v2145_v17 = vmul.f32 0.1, %v2098_v53  ;;  %v576_v18 = vmul.f32 %v2048_v14, %v532_v58  ;;  %vm753_vm4 = vcmp.lt.s32.totalorder %v2102_v55, 200  ;;  %v545_v58 = vld [vmem:[%s1983_s17 + $0xa0] sm:$0xff] }
  0xe5   : > { %1301 = vmatprep.subr.mxu0 %v848_v25  ;;  %1373 = vmatprep.subr.mxu1 %v848_v25  ;;  %v585_v19 = vmul.f32 %v2046_v13, %v541_v59  ;;  %v575_v24 = vmul.f32 %v2046_v13, %v531_v1  ;;  %v2152_v25 = vadd.f32 %v2056_v21, %v586_v8  ;;  %v2157_v28 = vadd.s32 56, %v2037_v61  ;;  %v825_v59 = vld [vmem:[#allocation9] sm:$0xff] }
  0xe6   : > { %1302 = vmatpush3.msra.mxu0 %v832_v30  ;;  %1389 = vmatpush3.msra.mxu1 %v832_v30  ;;  %v588_v26 = vmul.f32 %v2048_v14, %v544_v2  ;;  %v2160_v30 = vmul.f32 0.1, %v2113_v0  ;;  %v578_v33 = vmul.f32 %v2048_v14, %v534_v10  ;;  %v577_v34 = vmul.f32 %v2046_v13, %v533_v11  ;;  %v548_v11 = vld [vmem:[%s1983_s17 + $0xb8] sm:$0xff] }
  0xe7   : > { %1303 = vmatprep.subr.mxu0 %v847_v35  ;;  %1374 = vmatprep.subr.mxu1 %v847_v35  ;;  %v2163_v32 = vadd.f32 %v2054_v20, %v585_v19  ;;  %vm754_vm5 = vcmp.lt.s32.totalorder %v2110_v62, 200  ;;  %v536_v35 = vld [vmem:[%s1983_s17 + $0x58] sm:$0xff]  ;;  %v678_v38 = vmax.f32 %v2087_v47, %v2129_v6  ;;  %v681_v39 = vmax.f32 %v2090_v48, %v2132_v7  ;;  %v535_v48 = vld [vmem:[%s1983_s17 + $0x50] sm:$0xff] }
  0xe8   : > { %1304 = vmatpush3.msra.mxu0 %v831_v40  ;;  %1390 = vmatpush3.msra.mxu1 %v831_v40  ;;  %v663_v40 = vmul.f32 0.1, %v2152_v25  ;;  %v2175_v41 = vadd.f32 %v2056_v21, %v588_v26  ;;  %v680_v44 = vmax.f32 %v2095_v52, %v2142_v16  ;;  %vm747_vm6 = vcmp.lt.s32.totalorder %v2076_v37, 200 }
  0xe9   : > { %1305 = vmatprep.subr.mxu0 %v846_v45  ;;  %1375 = vmatprep.subr.mxu1 %v846_v45  ;;  %v683_v45 = vmax.f32 %v2098_v53, %v2145_v17  ;;  %v662_v46 = vmul.f32 0.1, %v2163_v32  ;;  %v587_v47 = vmul.f32 %v2046_v13, %v543_v27  ;;  %v2197_v1 = vadd.f32 %v2056_v21, %v578_v33 }
  0xea   : > { %1306 = vmatpush3.msra.mxu0 %v830_v50  ;;  %1243 = vmatprep.mubr.msk.f32.mxu0 %vm745_vm2, %v679_v57  ;;  %v665_v54 = vmul.f32 0.1, %v2175_v41  ;;  %v546_v57 = vld [vmem:[%s1983_s17 + $0xa8] sm:$0xff]  ;;  %v2200_v2 = vadd.f32 %v2054_v20, %v577_v34  ;;  %vm755_vm7 = vcmp.lt.s32.totalorder %v2121_v4, 200  ;;  %v2204_v6 = vadd.s32 96, %v2037_v61  ;;  %v553_v4 = vld [vmem:[%s1983_s17 + $0xe0] sm:$0xff] }
  0xeb   : > { %1307 = vmatprep.subr.mxu0 %v845_v51  ;;  %1391 = vmatpush3.msra.mxu1 %v830_v50  ;;  %v2186_v50 = vadd.f32 %v2056_v21, %v576_v18  ;;  %v694_v7 = vmax.f32 %v2163_v32, %v662_v46  ;;  %v632_v8 = vadd.f32 %v2054_v20, %v587_v47  ;;  %vm748_vm8 = vcmp.lt.s32.totalorder %v2082_v42, 200 }
  0xec   : > { %1308 = vmatpush3.msra.mxu0 %v829_v56  ;;  %1376 = vmatprep.subr.mxu1 %v845_v51  ;;  %v2189_v51 = vadd.f32 %v2054_v20, %v575_v24  ;;  %v579_v10 = vmul.f32 %v2046_v13, %v535_v48  ;;  %v590_v19 = vmul.f32 %v2048_v14, %v546_v57  ;;  %v538_v24 = vld [vmem:[%s1983_s17 + $0x68] sm:$0xff]  ;;  %v2244_v22 = vmul.f32 0.1, %v2197_v1 }
  0xed   : > { %1309 = vmatprep.subr.mxu0 %v844_v63  ;;  %1392 = vmatpush3.msra.mxu1 %v829_v56  ;;  %v580_v56 = vmul.f32 %v2048_v14, %v536_v35  ;;  %v682_v26 = vmax.f32 %v2113_v0, %v2160_v30  ;;  %v2226_v27 = vmul.f32 0.1, %v2186_v50  ;;  %v664_v32 = vmul.f32 0.1, %v632_v8  ;;  %v547_v30 = vld [vmem:[%s1983_s17 + $0xb0] sm:$0xff] }
  0xee   : > { %1310 = vmatpush3.msra.mxu0 %v828_v15  ;;  %1377 = vmatprep.subr.mxu1 %v844_v63  ;;  %v695_v63 = vmax.f32 %v2152_v25, %v663_v40  ;;  %v2221_v25 = vadd.s32 112, %v2037_v61  ;;  %v2232_v33 = vmul.f32 0.1, %v2189_v51  ;;  %v635_v34 = vadd.f32 %v2056_v21, %v590_v19  ;;  %v551_v19 = vld [vmem:[%s1983_s17 + $0xd0] sm:$0xff] }
  0xef   : > { %1311 = vmatprep.subr.mxu0 %v843_v23  ;;  %1393 = vmatpush3.msra.mxu1 %v828_v15  ;;  %v2211_v15 = vadd.s32 104, %v2037_v61  ;;  %v2215_v18 = vadd.f32 %v2056_v21, %v580_v56  ;;  %v592_v0 = vmul.f32 %v2048_v14, %v548_v11  ;;  %v2250_v40 = vadd.f32 %v2054_v20, %v579_v10 }
  0xf0   : > { %1312 = vmatpush3.msra.mxu0 %v827_v29  ;;  %1378 = vmatprep.subr.mxu1 %v843_v23  ;;  %v589_v23 = vmul.f32 %v2046_v13, %v545_v58  ;;  %vm749_vm9 = vcmp.lt.s32.totalorder %v2107_v60, 200  ;;  %v667_v46 = vmul.f32 0.1, %v635_v34  ;;  %v591_v55 = vmul.f32 %v2046_v13, %v547_v30  ;;  %v556_v30 = vld [vmem:[%s1983_s17 + $0xf8] sm:$0xff] }
  0xf1   : > { %1313 = vmatprep.subr.mxu0 %v842_v36  ;;  %1394 = vmatpush3.msra.mxu1 %v827_v29  ;;  %v697_v29 = vmax.f32 %v2175_v41, %v665_v54  ;;  %v582_v41 = vmul.f32 %v2048_v14, %v538_v24  ;;  %v2265_v54 = vadd.s32 120, %v2037_v61  ;;  %v685_v56 = vmax.f32 %v2186_v50, %v2226_v27  ;;  %v549_v50 = vld [vmem:[%s1983_s17 + $0xc0] sm:$0xff] }
  0xf2   : > { %1314 = vmatpush3.msra.mxu0 %v826_v43  ;;  %1379 = vmatprep.subr.mxu1 %v842_v36  ;;  %v634_v35 = vadd.f32 %v2054_v20, %v589_v23  ;;  %v537_v36 = vld [vmem:[%s1983_s17 + $0x60] sm:$0xff]  ;;  %v684_v57 = vmax.f32 %v2189_v51, %v2232_v33  ;;  %v699_v58 = vmax.f32 %v635_v34, %v667_v46  ;;  %v2285_v61 = vmul.f32 0.1, %v2250_v40  ;;  %v552_v51 = vld [vmem:[%s1983_s17 + $0xd8] sm:$0xff]  ;;  %v554_v23 = vld [vmem:[%s1983_s17 + $0xe8] sm:$0xff] }
  0xf3   : > { %1315 = vmatprep.subr.mxu0 %v841_v49  ;;  %1395 = vmatpush3.msra.mxu1 %v826_v43  ;;  %v2257_v43 = vmul.f32 0.1, %v2215_v18  ;;  %v581_v48 = vmul.f32 %v2046_v13, %v537_v36  ;;  %v2288_v31 = vadd.f32 %v2056_v21, %v582_v41  ;;  %v636_v16 = vadd.f32 %v2054_v20, %v591_v55  ;;  %v555_v46 = vld [vmem:[%s1983_s17 + $0xf0] sm:$0xff] }
  0xf4   : > { %1316 = vmatpush3.msra.mxu0 %v825_v59  ;;  %1380 = vmatprep.subr.mxu1 %v841_v49  ;;  %v666_v47 = vmul.f32 0.1, %v634_v35  ;;  %v637_v49 = vadd.f32 %v2056_v21, %v592_v0  ;;  %vm750_vm10 = vcmp.lt.s32.totalorder %v2118_v3, 200  ;;  %v741_v11 = vadd.s32 %v2043_v9, %v2204_v6 }
  0xf5   : > { %1244 = vmatmul.mubr.msk.f32.vlgmr.msra.gmra.mxu0 %vm745_vm2, %v678_v38  ;;  %1396 = vmatpush3.msra.mxu1 %v825_v59  ;;  %v2247_v38 = vmul.f32 0.1, %v2200_v2  ;;  %v740_v59 = vadd.s32 %v2043_v9, %v2124_v5  ;;  %v687_v5 = vmax.f32 %v2197_v1, %v2244_v22  ;;  %v689_v17 = vmax.f32 %v2215_v18, %v2257_v43 }
  0xf6   : > { %1245 = vmatprep.mubr.msk.f32.mxu0 %vm746_vm3, %v681_v39  ;;  %1259 = vmatprep.mubr.msk.f32.mxu1 %vm753_vm4, %v695_v63  ;;  %v696_v39 = vmax.f32 %v632_v8, %v664_v32  ;;  %v550_v63 = vld [vmem:[%s1983_s17 + $0xc8] sm:$0xff]  ;;  %v669_v52 = vmul.f32 0.1, %v637_v49  ;;  %v2306_v1 = vadd.f32 %v2054_v20, %v581_v48  ;;  %v539_v8 = vld [vmem:[%s1983_s17 + $0x70] sm:$0xff]  ;;  %v593_v18 = vmul.f32 %v2046_v13, %v549_v50 }
  0xf7   : > { %1260 = vmatmul.mubr.msk.f32.vlgmr.msra.gmra.mxu1 %vm753_vm4, %v694_v7  ;;  %v686_v53 = vmax.f32 %v2200_v2, %v2247_v38  ;;  %v668_v2 = vmul.f32 0.1, %v636_v16  ;;  %v594_v62 = vmul.f32 %v2048_v14, %v550_v63  ;;  %vm756_vm11 = vcmp.lt.s32.totalorder %v740_v59, 200 }
  0xf8   : > { %1261 = vmatprep.mubr.msk.f32.mxu1 %vm754_vm5, %v697_v29  ;;  %v701_v7 = vmax.f32 %v637_v49, %v669_v52  ;;  %v688_v24 = vmax.f32 %v2250_v40, %v2285_v61  ;;  %v659_v37 = vmul.f32 0.1, %v2288_v31  ;;  %v596_v27 = vmul.f32 %v2048_v14, %v552_v51 }
  0xf9   : > { %1246 = vmatmul.mubr.msk.f32.gmra.mxu0 %vm746_vm3, %v680_v44  ;;  %v540_v44 = vld [vmem:[%s1983_s17 + $0x78] sm:$0xff]  ;;  %v700_v6 = vmax.f32 %v636_v16, %v668_v2  ;;  %v583_v29 = vmul.f32 %v2046_v13, %v539_v8  ;;  %v638_v32 = vadd.f32 %v2054_v20, %v593_v18  ;;  %v742_v33 = vadd.s32 %v2043_v9, %v2211_v15 }
  0xfa   : > { %1247 = vmatprep.mubr.msk.f32.mxu0 %vm747_vm6, %v683_v45  ;;  %v698_v45 = vmax.f32 %v634_v35, %v666_v47  ;;  %v584_v10 = vmul.f32 %v2048_v14, %v540_v44  ;;  %v641_v35 = vadd.f32 %v2056_v21, %v596_v27  ;;  %v595_v36 = vmul.f32 %v2046_v13, %v551_v19 }
  0xfb   : > { %1262 = vmatmul.mubr.msk.f32.gmra.mxu1 %vm754_vm5, %v696_v39  ;;  %v598_v0 = vmul.f32 %v2048_v14, %v554_v23  ;;  %v658_v22 = vmul.f32 0.1, %v2306_v1  ;;  %vm757_vm12 = vcmp.lt.s32.totalorder %v741_v11, 200  ;;  %v670_v15 = vmul.f32 0.1, %v638_v32 }
  0xfc   : > { %1263 = vmatprep.mubr.msk.f32.mxu1 %vm755_vm7, %v699_v58  ;;  %v629_v38 = vadd.f32 %v2056_v21, %v584_v10  ;;  %v673_v41 = vmul.f32 0.1, %v641_v35  ;;  %v640_v39 = vadd.f32 %v2054_v20, %v595_v36  ;;  %v628_v42 = vadd.f32 %v2054_v20, %v583_v29 }
  0xfd   : > { %1248 = vmatmul.mubr.msk.f32.gmra.mxu0 %vm747_vm6, %v682_v26  ;;  %v639_v26 = vadd.f32 %v2056_v21, %v594_v62  ;;  %v643_v43 = vadd.f32 %v2056_v21, %v598_v0  ;;  %v702_v47 = vmax.f32 %v638_v32, %v670_v15  ;;  %v597_v48 = vmul.f32 %v2046_v13, %v553_v4 }
  0xfe   : > { %1249 = vmatprep.mubr.msk.f32.mxu0 %vm748_vm8, %v685_v56  ;;  %v600_v49 = vmul.f32 %v2048_v14, %v556_v30  ;;  %v705_v55 = vmax.f32 %v641_v35, %v673_v41  ;;  %vm758_vm13 = vcmp.lt.s32.totalorder %v742_v33, 200  ;;  %v672_v56 = vmul.f32 0.1, %v640_v39 }
  0xff   : > { %1264 = vmatmul.mubr.msk.f32.gmra.mxu1 %vm755_vm7, %v698_v45  ;;  %v671_v34 = vmul.f32 0.1, %v639_v26  ;;  %v743_v58 = vadd.s32 %v2043_v9, %v2221_v25  ;;  %v642_v59 = vadd.f32 %v2054_v20, %v597_v48  ;;  %v599_v61 = vmul.f32 %v2046_v13, %v555_v46 }
 0x100   : > { %1265 = vmatprep.mubr.msk.f32.mxu1 %vm756_vm11, %v701_v7  ;;  %v645_v63 = vadd.f32 %v2056_v21, %v600_v49  ;;  %v691_v14 = vmax.f32 %v2288_v31, %v659_v37  ;;  %vm751_vm14 = vcmp.lt.s32.totalorder %v2138_v12, 200  ;;  %v661_v52 = vmul.f32 0.1, %v629_v38 }
 0x101   : > { %1250 = vmatmul.mubr.msk.f32.gmra.mxu0 %vm748_vm8, %v684_v57  ;;  %v703_v40 = vmax.f32 %v639_v26, %v671_v34  ;;  %v675_v57 = vmul.f32 0.1, %v643_v43  ;;  %v736_v60 = vadd.s32 %v2043_v9, %v2157_v28  ;;  %v704_v25 = vmax.f32 %v640_v39, %v672_v56 }
 0x102   : > { %1251 = vmatprep.mubr.msk.f32.mxu0 %vm749_vm9, %v687_v5  ;;  %v674_v16 = vmul.f32 0.1, %v642_v59  ;;  %v644_v44 = vadd.f32 %v2054_v20, %v599_v61  ;;  %v677_v21 = vmul.f32 0.1, %v645_v63  ;;  %v690_v31 = vmax.f32 %v2306_v1, %v658_v22 }
 0x103   : > { %1266 = vmatmul.mubr.msk.f32.gmra.mxu1 %vm756_vm11, %v700_v6  ;;  %v707_v13 = vmax.f32 %v643_v43, %v675_v57  ;;  %v660_v50 = vmul.f32 0.1, %v628_v42  ;;  %vm759_vm15 = vcmp.lt.s32.totalorder %v743_v58, 200  ;;  %v744_v28 = vadd.s32 %v2043_v9, %v2265_v54 }
 0x104   : > { %1267 = vmatprep.mubr.msk.f32.mxu1 %vm757_vm12, %v703_v40  ;;  %v693_v5 = vmax.f32 %v629_v38, %v661_v52  ;;  %vm752_vm0 = vcmp.lt.s32.totalorder %v736_v60, 200  ;;  %v706_v20 = vmax.f32 %v642_v59, %v674_v16 }
 0x105   : > { %1252 = vmatmul.mubr.msk.f32.gmra.mxu0 %vm749_vm9, %v686_v53  ;;  %v676_v53 = vmul.f32 0.1, %v644_v44  ;;  %v692_v3 = vmax.f32 %v628_v42, %v660_v50  ;;  %vm760_vm1 = vcmp.lt.s32.totalorder %v744_v28, 200 }
 0x106   : > { %1253 = vmatprep.mubr.msk.f32.mxu0 %vm750_vm10, %v689_v17  ;;  %v709_v17 = vmax.f32 %v645_v63, %v677_v21 }
 0x107   : > { %1268 = vmatmul.mubr.msk.f32.gmra.mxu1 %vm757_vm12, %v702_v47  ;;  %v708_v9 = vmax.f32 %v644_v44, %v676_v53 }
 0x108   : > { %1269 = vmatprep.mubr.msk.f32.mxu1 %vm758_vm13, %v705_v55 }
 0x109   : > { %1254 = vmatmul.mubr.msk.f32.gmra.mxu0 %vm750_vm10, %v688_v24 }
 0x10a   : > { %1255 = vmatprep.mubr.msk.f32.mxu0 %vm751_vm14, %v691_v14 }
 0x10b   : > { %1270 = vmatmul.mubr.msk.f32.gmra.mxu1 %vm758_vm13, %v704_v25 }
 0x10c   : > { %1271 = vmatprep.mubr.msk.f32.mxu1 %vm759_vm15, %v707_v13 }
 0x10d   : > { %1256 = vmatmul.mubr.msk.f32.gmra.mxu0 %vm751_vm14, %v690_v31 }
 0x10e   : > { %1257 = vmatprep.mubr.msk.f32.mxu0 %vm752_vm0, %v693_v5 }
 0x10f   : > { %1272 = vmatmul.mubr.msk.f32.gmra.mxu1 %vm759_vm15, %v706_v20 }
 0x110   : > { %1273 = vmatprep.mubr.msk.f32.mxu1 %vm760_vm1, %v709_v17 }
 0x111   : > { %1258 = vmatmul.mubr.msk.f32.gmra.mxu0 %vm752_vm0, %v692_v3 }
 0x113   : > { %1274 = vmatmul.mubr.msk.f32.gmra.mxu1 %vm760_vm1, %v708_v9 }
 0x1b5   : > { %v1317_v54 = vpop.f32.mrf.mxu0 }
 0x1b7   : > { %v1318_v45 = vpop.f32.mrf.mxu0  ;;  %v1341_v51 = vpop.f32.mrf.mxu1 }
 0x1b8   : > { %v1319_v1 = vadd.f32 %v1318_v45, %v1317_v54 }
 0x1b9   : > { %v1320_v7 = vpop.f32.mrf.mxu0  ;;  %v1342_v2 = vpop.f32.mrf.mxu1 }
 0x1ba   : > { %1002 = vst [vmem:[%s1996_s12] sm:$0xff] %v1319_v1  ;;  %v2378_v12 = vadd.f32 %v1342_v2, %v1341_v51  ;;  %v1043_v40 = vmul.f32 %v1319_v1, %v1319_v1 }
 0x1bb   : > { %v1321_v8 = vpop.f32.mrf.mxu0  ;;  %v1344_v62 = vpop.f32.mrf.mxu1 }
 0x1bc   : > { %v1322_v10 = vadd.f32 %v1321_v8, %v1320_v7  ;;  %1010 = vst [vmem:[%s1996_s12 + $0x40] sm:$0xff] %v2378_v12  ;;  %v1051_v2 = vmul.f32 %v2378_v12, %v2378_v12 }
 0x1bd   : > { %v1323_v11 = vpop.f32.mrf.mxu0  ;;  %v1345_v18 = vpop.f32.mrf.mxu1 }
 0x1be   : > { %1003 = vst [vmem:[%s1996_s12 + $0x8] sm:$0xff] %v1322_v10  ;;  %v2383_v19 = vadd.f32 %v1345_v18, %v1344_v62  ;;  %v1044_v30 = vmul.f32 %v1322_v10, %v1322_v10  ;;  %v1019_v41 = vadd.f32 %v1322_v10, %v1319_v1 }
 0x1bf   : > { %v1324_v23 = vpop.f32.mrf.mxu0  ;;  %v1347_v24 = vpop.f32.mrf.mxu1 }
 0x1c0   : > { %v1325_v37 = vadd.f32 %v1324_v23, %v1323_v11  ;;  %1011 = vst [vmem:[%s1996_s12 + $0x48] sm:$0xff] %v2383_v19  ;;  %v1059_v47 = vadd.f32 %v1044_v30, %v1043_v40  ;;  %v1052_v10 = vmul.f32 %v2383_v19, %v2383_v19 }
 0x1c1   : > { %v1326_v26 = vpop.f32.mrf.mxu0  ;;  %v1348_v27 = vpop.f32.mrf.mxu1 }
 0x1c2   : > { %1004 = vst [vmem:[%s1996_s12 + $0x10] sm:$0xff] %v1325_v37  ;;  %v2388_v6 = vadd.f32 %v1348_v27, %v1347_v24  ;;  %v1045_v39 = vmul.f32 %v1325_v37, %v1325_v37  ;;  %v1020_v48 = vadd.f32 %v1325_v37, %v1019_v41 }
 0x1c3   : > { %v1327_v29 = vpop.f32.mrf.mxu0  ;;  %v1350_v32 = vpop.f32.mrf.mxu1 }
 0x1c4   : > { %v1328_v33 = vadd.f32 %v1327_v29, %v1326_v26  ;;  %1012 = vst [vmem:[%s1996_s12 + $0x50] sm:$0xff] %v2388_v6  ;;  %v1060_v58 = vadd.f32 %v1059_v47, %v1045_v39  ;;  %v1053_v23 = vmul.f32 %v2388_v6, %v2388_v6 }
 0x1c5   : > { %v1329_v34 = vpop.f32.mrf.mxu0  ;;  %v1351_v35 = vpop.f32.mrf.mxu1 }
 0x1c6   : > { %1005 = vst [vmem:[%s1996_s12 + $0x18] sm:$0xff] %v1328_v33  ;;  %v2393_v36 = vadd.f32 %v1351_v35, %v1350_v32  ;;  %v1046_v49 = vmul.f32 %v1328_v33, %v1328_v33  ;;  %v1021_v59 = vadd.f32 %v1328_v33, %v1020_v48 }
 0x1c7   : > { %v1330_v0 = vpop.f32.mrf.mxu0  ;;  %v1353_v4 = vpop.f32.mrf.mxu1 }
 0x1c8   : > { %v1331_v22 = vadd.f32 %v1330_v0, %v1329_v34  ;;  %1013 = vst [vmem:[%s1996_s12 + $0x58] sm:$0xff] %v2393_v36  ;;  %v1061_v60 = vadd.f32 %v1060_v58, %v1046_v49  ;;  %v1054_v26 = vmul.f32 %v2393_v36, %v2393_v36  ;;  %v1018_v49 = vld [vmem:[#allocation11] sm:$0x1] }
 0x1c9   : > { %v1332_v38 = vpop.f32.mrf.mxu0  ;;  %v1354_v15 = vpop.f32.mrf.mxu1 }
 0x1ca   : > { %1006 = vst [vmem:[%s1996_s12 + $0x20] sm:$0xff] %v1331_v22  ;;  %v1355_v43 = vadd.f32 %v1354_v15, %v1353_v4  ;;  %v1047_v63 = vmul.f32 %v1331_v22, %v1331_v22  ;;  %v1022_v25 = vadd.f32 %v1331_v22, %v1021_v59 }
 0x1cb   : > { %v1333_v46 = vpop.f32.mrf.mxu0  ;;  %v1356_v42 = vpop.f32.mrf.mxu1 }
 0x1cc   : > { %v1334_v55 = vadd.f32 %v1333_v46, %v1332_v38  ;;  %1014 = vst [vmem:[%s1996_s12 + $0x60] sm:$0xff] %v1355_v43  ;;  %v1062_v31 = vadd.f32 %v1061_v60, %v1047_v63  ;;  %v1055_v32 = vmul.f32 %v1355_v43, %v1355_v43 }
 0x1cd   : > { %v1335_v56 = vpop.f32.mrf.mxu0  ;;  %v1357_v57 = vpop.f32.mrf.mxu1 }
 0x1ce   : > { %1007 = vst [vmem:[%s1996_s12 + $0x28] sm:$0xff] %v1334_v55  ;;  %v1358_v61 = vadd.f32 %v1357_v57, %v1356_v42  ;;  %v1048_v16 = vmul.f32 %v1334_v55, %v1334_v55  ;;  %v1023_v50 = vadd.f32 %v1334_v55, %v1022_v25  ;;  %v1042_v57 = vld [vmem:[#allocation11 + $0x1] sm:$0x1] }
 0x1cf   : > { %v1336_v14 = vpop.f32.mrf.mxu0  ;;  %v1359_v52 = vpop.f32.mrf.mxu1 }
 0x1d0   : > { %v1337_v44 = vadd.f32 %v1336_v14, %v1335_v56  ;;  %1015 = vst [vmem:[%s1996_s12 + $0x68] sm:$0xff] %v1358_v61  ;;  %v1063_v17 = vadd.f32 %v1062_v31, %v1048_v16  ;;  %v1056_v0 = vmul.f32 %v1358_v61, %v1358_v61 }
 0x1d1   : > { %v1338_v13 = vpop.f32.mrf.mxu0  ;;  %v1360_v21 = vpop.f32.mrf.mxu1 }
 0x1d2   : > { %1008 = vst [vmem:[%s1996_s12 + $0x30] sm:$0xff] %v1337_v44  ;;  %v1049_v28 = vmul.f32 %v1337_v44, %v1337_v44  ;;  %v1361_v5 = vadd.f32 %v1360_v21, %v1359_v52  ;;  %v1024_v3 = vadd.f32 %v1337_v44, %v1023_v50 }
 0x1d3   : > { %v1339_v20 = vpop.f32.mrf.mxu0  ;;  %v1362_v53 = vpop.f32.mrf.mxu1 }
 0x1d4   : > { %v1340_v9 = vadd.f32 %v1339_v20, %v1338_v13  ;;  %1016 = vst [vmem:[%s1996_s12 + $0x70] sm:$0xff] %v1361_v5  ;;  %v1064_v45 = vadd.f32 %v1063_v17, %v1049_v28  ;;  %v1057_v30 = vmul.f32 %v1361_v5, %v1361_v5 }
 0x1d5   : > { %v1363_v54 = vpop.f32.mrf.mxu1 }
 0x1d6   : > { %1009 = vst [vmem:[%s1996_s12 + $0x38] sm:$0xff] %v1340_v9  ;;  %v1025_v51 = vadd.f32 %v1340_v9, %v1024_v3  ;;  %v1050_v1 = vmul.f32 %v1340_v9, %v1340_v9  ;;  %v1364_v7 = vadd.f32 %v1363_v54, %v1362_v53 }
 0x1d8   : > { %v1026_v8 = vadd.f32 %v2378_v12, %v1025_v51  ;;  %v1065_v62 = vadd.f32 %v1064_v45, %v1050_v1  ;;  %1017 = vst [vmem:[%s1996_s12 + $0x78] sm:$0xff] %v1364_v7  ;;  %v1058_v15 = vmul.f32 %v1364_v7, %v1364_v7 }
 0x1da   : > { %v1027_v11 = vadd.f32 %v2383_v19, %v1026_v8  ;;  %v1066_v18 = vadd.f32 %v1065_v62, %v1051_v2 }
 0x1dc   : > { %v1067_v24 = vadd.f32 %v1066_v18, %v1052_v10  ;;  %v1028_v37 = vadd.f32 %v2388_v6, %v1027_v11 }
 0x1de   : > { %v1029_v27 = vadd.f32 %v2393_v36, %v1028_v37  ;;  %v1068_v12 = vadd.f32 %v1067_v24, %v1053_v23 }
 0x1e0   : > { %v1030_v29 = vadd.f32 %v1355_v43, %v1029_v27  ;;  %v1069_v33 = vadd.f32 %v1068_v12, %v1054_v26 }
 0x1e2   : > { %v1070_v34 = vadd.f32 %v1069_v33, %v1055_v32  ;;  %v1031_v35 = vadd.f32 %v1358_v61, %v1030_v29 }
 0x1e4   : > { %v1071_v19 = vadd.f32 %v1070_v34, %v1056_v0  ;;  %v1032_v4 = vadd.f32 %v1361_v5, %v1031_v35 }
 0x1e6   : > { %v1072_v22 = vadd.f32 %v1071_v19, %v1057_v30  ;;  %v1033_v38 = vadd.f32 %v1364_v7, %v1032_v4 }
 0x1e8   : > { %v1034_v40 = vrot.slane %v1033_v38, 4  ;;  %v1073_v6 = vadd.f32 %v1072_v22, %v1058_v15 }
 0x1ea   : > { %v1035_v41 = vadd.f32 %v1034_v40, %v1033_v38  ;;  %v1074_v39 = vrot.slane %v1073_v6, 4 }
 0x1ec   : > { %v1036_v46 = vrot.slane %v1035_v41, 2  ;;  %v1075_v42 = vadd.f32 %v1074_v39, %v1073_v6 }
 0x1ee   : > { %v1037_v36 = vadd.f32 %v1036_v46, %v1035_v41  ;;  %v1076_v47 = vrot.slane %v1075_v42, 2 }
 0x1f0   : > { %v1038_v48 = vrot.slane %v1037_v36, 1  ;;  %v1077_v43 = vadd.f32 %v1076_v47, %v1075_v42 }
 0x1f2   : > { %v1039_v55 = vadd.f32 %v1038_v48, %v1037_v36  ;;  %v1078_v56 = vrot.slane %v1077_v43, 1 }
 0x1f4   : > { %v1040_v58 = vadd.f32 %v1039_v55, %v1018_v49  ;;  %v1079_v59 = vadd.f32 %v1078_v56, %v1077_v43 }
 0x1f6   : > { %1041 = vst [vmem:[#allocation11] sm:$0x1] %v1040_v58  ;;  %v1080_v63 = vadd.f32 %v1079_v59, %v1042_v57 }
 0x1f8   : > { %1081 = vst [vmem:[#allocation11 + $0x1] sm:$0x1] %v1080_v63 }
 0x1f9 PF: > { %s2553_s21 = sld [smem:[#allocation21_spill]]  ;;  %p1090_p1 = scmp.eq.s32.totalorder %s1758_s25, 1 }
 0x1fa   : > { %s1098_s29 = sshll.u32 %s1996_s12, 4  ;;  %s2554_s13 = sld [smem:[#allocation27_spill]]  ;;  %s2420_s29 = int_to_ptr.vmem [resolvable:$true] %s1098_s29 }
 0x1fb   : > { %s2581_s24 = smov (!%p1090_p1, %s1754_s24), 0  ;;  %s2429_s3 = scalar_lea.sflag [#allocation6], %s281_s5 }
 0x1fc   : > { %s1284_s8 = sshll.u32 %s2581_s24, 11  ;;  %s1618_s18 = scalar_lea.vmem %s2420_s29, 2048 }
 0x1fd   : > { %p1619_p4 = scmp.ne.s32.totalorder %s2420_s29, %s1618_s18  ;;  %s1782_s25 = smov [#allocation10]  }
 0x1fe   : > { %s1622_s28 = sshll.u32 %s1782_s25, 4  ;;  %s1623_s28 = int_to_ptr.vmem [resolvable:$false] %s1622_s28 }
 0x1ff   : > { %p2555_p2 = scmp.ne.s32.totalorder %s2553_s21, 0  ;;  %s1624_s1 = scalar_lea.vmem %s1623_s28, 4096 }
 0x200   : > { %s2425_s30 = scalar_lea.hbm %s2554_s13, %s1284_s8  ;;  %p1625_p7 = scmp.lt.s32.totalorder %s2420_s29, %s1623_s28 }
 0x201   : > { %p1620_p11 = pnand %p1619_p4, %p2555_p2  ;;  %p1626_p3 = scmp.lt.s32.totalorder %s1624_s1, %s1618_s18 }
 0x203   : > { %p1621_p13 = pneg %p1620_p11  ;;  %p1627_p6 = por %p1626_p3, %p1625_p7 }
 0x205   : > { %p1628_p10 = pnand %p1627_p6, %p1621_p13 }
 0x207   : > { %1631 = shalt.err (!%p1628_p10)
}
 0x208   : > { %s1632_s24 = scalar_lea.hbm %s2425_s30, 2048  ;;  %s1636_s17 = scalar_lea.hbm %s2554_s13, 4096 }
 0x209   : > { %p1633_p12 = scmp.ne.s32.totalorder %s2425_s30, %s1632_s24  ;;  %p1637_p5 = scmp.lt.s32.totalorder %s2425_s30, %s2554_s13 }
 0x20a   : > { %p1638_p9 = scmp.lt.s32.totalorder %s1636_s17, %s1632_s24 }
 0x20b   : > { %p1634_p8 = pnand %p1633_p12, %p2555_p2 }
 0x20c   : > { %p1639_p1 = por %p1638_p9, %p1637_p5 }
 0x20d   : > { %p1635_p0 = pneg %p1634_p8 }
 0x20f   : > { %p1640_p4 = pnand %p1639_p1, %p1635_p0 }
 0x211   : > { %1643 = shalt.err (!%p1640_p4)
}
 0x212   : > { %s1783_s12 = smov 128   ;;  %s2556_s7 = sld [smem:[#allocation20_spill]] }
 0x213   : > { %s1784_s10 = smov 8   ;;  %s1785_s14 = smov [#allocation11]  }
 0x214   : > { %1407 = dma.vmem_to_hbm [thread:$0]  (%p2555_p2), %s2420_s29, 2048, %s2425_s30, %s2429_s3, %s1783_s12, %s1783_s12, %s1784_s10  }
 0x215   : > { %s1112_s8 = sshll.u32 %s1785_s14, 4  ;;  %s1113_s8 = int_to_ptr.vmem [resolvable:$true] %s1112_s8 }
 0x216   : > { %s1644_s16 = scalar_lea.vmem %s1113_s8, 32  ;;  %p1651_p6 = scmp.lt.s32.totalorder %s1113_s8, %s1113_s8 }
 0x217   : > { %p1645_p11 = scmp.ne.s32.totalorder %s1113_s8, %s1644_s16  ;;  %p1652_p10 = scmp.lt.s32.totalorder %s1644_s16, %s1644_s16 }
 0x218   : > { %p2557_p13 = scmp.ne.s32.totalorder %s2556_s7, 0 }
 0x219   : > { %p1653_p12 = por %p1652_p10, %p1651_p6 }
 0x21a   : > { %p1646_p7 = pnand %p1645_p11, %p2557_p13 }
 0x21c   : > { %p1647_p3 = pneg %p1646_p7 }
 0x21e   : > { %p1654_p8 = pnand %p1653_p12, %p1647_p3 }
 0x220   : > { %1657 = shalt.err (!%p1654_p8)
}
 0x221   : > { %s2558_s25 = sld [smem:[#allocation28_spill]] }
 0x227   : > { %1409 = dma.vmem_to_hbm [thread:$0]  (%p2557_p13), %s1113_s8, 32, %s2558_s25, [#allocation12]  }
 0x228   : > { %1721 = dma.done.wait (%p2557_p13), [#allocation12], 32  }
 0x229   : > { %1723 = vsyncadd (%p2557_p13), [#allocation12], 4294967264 }
 0x22a PF: > { %s2559_s21 = sld [smem:[#allocation19_spill]] }
 0x22b   : > { %s2560_s29 = sld [smem:[#allocation17_spill]] }
 0x22c   : > { %s2561_s30 = sld [smem:[#allocation22_spill]] }
 0x230   : > { %p1435_p2 = scmp.ge.s32.totalorder %s2559_s21, 2 }
 0x231   : > { %s1128_s3 = sand.u32 1, %s2560_s29  }
 0x232   : > { %p2562_p0 = scmp.ne.s32.totalorder %s2561_s30, 0  ;;  %s1129_s28 = scalar_lea.sflag [#allocation6], %s1128_s3 }
 0x234   : > { %p1425_p5 = pnand %p1435_p2, %p2562_p0 }
 0x236   : > { %p1426_p9 = pneg %p1425_p5 }
 0x238   : > { %1725 = dma.done.wait (%p1426_p9), %s1129_s28, 2048  }
 0x239   : > { %1727 = vsyncadd (%p1426_p9), %s1129_s28, 4294965248  ;;  %s24_s28 = sadd.s32 1, %s2559_s21   ;;  %s2563_s25 = sld [smem:[#allocation18_spill]] }
 0x23a   : > { %p21_p1 = scmp.ge.s32.totalorder %s24_s28, 6   ;;  %s2564_s1 = sld [smem:[#allocation23_spill]] }
 0x23b   : > { %s2565_s27 = sld [smem:[#allocation24_spill]]  ;;  %s2566_s18 = smov %s1734_s19 }
 0x23c   : > { %s2567_s19 = smov %s1738_s20  ;;  %s2568_s20 = smov %s1974_s4 }
 0x23d   : > { %s2569_s21 = smov %s1746_s22  ;;  %s2570_s22 = smov %s1750_s23 }
 0x23e   : > { %s2571_s23 = smov %s1963_s15  ;;  %s2572_s24 = smov %s1762_s26 }
 0x23f   :  { %23 = sbr.rel (!%p21_p1) target bundleno = 16 (0x10), region = 117 }
 0x240   : > { %s2573_s26 = smov %s2564_s1 }
 0x244   :  { %1134 = vsyncpa [#allocation5], 1 }
 0x245   :  { %1136 = vsyncpa [#allocation5 + $0x1], 1 }
 0x246   :  { %1137 = vsyncpa [#allocation8], 1 }
 0x247   :  { %1138 = vsyncpa [#allocation6], 1 }
 0x248   :  { %1140 = vsyncpa [#allocation6 + $0x1], 1 }
 0x249   :  { %1141 = vsyncpa [#allocation12], 1 }

</bundles_post_ra>
